<compile_context>
chip_gen: v7x
topology: tpu7x:2x2x1
jax: 0.10.0
libtpu: 0.0.40
codegen_flags: <defaults>
</compile_context>

<pallas_src>
import functools
import numpy as np
import jax
import jax.numpy as jnp
from jax.experimental import pallas as pl

NEG_SLOPE = 0.01  # torch.nn.LeakyReLU default negative_slope


def _out_hw(h):
    # Conv2d(kernel=3, stride=2, padding=1) output size
    return (h + 2 - 3) // 2 + 1


# --------------------------------------------------------------------------
# Fused kernel: all conv layers + LeakyReLU + flatten + FC in one invocation.
# --------------------------------------------------------------------------
def _fused_fwd_kernel(x_ref, *refs, n_layers):
    """refs = [R0,R1,R2, BW0,BW1,BW2, bias] * n_layers + [fc_w_t, fc_b] + [out_ref]."""
    out_ref = refs[-1]
    prefs = refs[:-1]

    a = x_ref[...].astype(jnp.float32)                 # (N*H0, W0*C0), lane-dense slab
    idx = 0
    for _ in range(n_layers):                          # unrolled at trace time
        r0, r1, r2 = prefs[idx + 0], prefs[idx + 1], prefs[idx + 2]
        w0, w1, w2 = prefs[idx + 3], prefs[idx + 4], prefs[idx + 5]
        b_ref = prefs[idx + 6]
        idx += 7

        acc = None
        for r_ref, w_ref in ((r0, w0), (r1, w1), (r2, w2)):
            # row-gather (stride-2 rows + zero padding) then block-banded conv weights
            g = jnp.dot(r_ref[...], a, preferred_element_type=jnp.float32)
            t = jnp.dot(g, w_ref[...], preferred_element_type=jnp.float32)
            acc = t if acc is None else acc + t
        acc = acc + b_ref[...]
        a = jnp.where(acc >= 0, acc, NEG_SLOPE * acc)  # LeakyReLU
        # `a` is now the next layer's (N*Ho, Wo*Cout) slab; after the last conv
        # layer Ho == Wo == 1, so `a` == x.view(-1, z_dims).

    fc_w_t, fc_b = prefs[idx], prefs[idx + 1]          # gain already folded in
    out = jnp.dot(a, fc_w_t[...], preferred_element_type=jnp.float32) + fc_b[...]
    out_ref[...] = out.astype(out_ref.dtype)


# --------------------------------------------------------------------------
# Host-side precompute: row-gather and block-banded weight matrices per layer.
# --------------------------------------------------------------------------
def build_fused_params(conv_params, fc_w, fc_b, input_res, batch):
    flat = []
    H = W = int(input_res)
    N = int(batch)
    for (w, b) in conv_params:                 # w: (3,3,Cin,Cout) HWIO, b: (Cout,)
        w = np.asarray(w, dtype=np.float32)
        b = np.asarray(b, dtype=np.float32)
        Cin, Cout = w.shape[2], w.shape[3]
        Ho, Wo = _out_hw(H), _out_hw(W)

        Rs, BWs = [], []
        for kh in range(3):
            # R_kh[n*Ho+i, n*H+h] = 1  iff  h == 2*i + kh - 1 (in bounds)
            R = np.zeros((N * Ho, N * H), np.float32)
            for n in range(N):
                for i in range(Ho):
                    h = 2 * i + kh - 1
                    if 0 <= h < H:
                        R[n * Ho + i, n * H + h] = 1.0
            Rs.append(R)

            # BW_kh[w*Cin+ci, j*Cout+co] = W[kh, w-2j+1, ci, co]  (kw in {0,1,2})
            BW = np.zeros((W * Cin, Wo * Cout), np.float32)
            for j in range(Wo):
                for kw in range(3):
                    wc = 2 * j + kw - 1
                    if 0 <= wc < W:
                        BW[wc * Cin:(wc + 1) * Cin, j * Cout:(j + 1) * Cout] = w[kh, kw]
            BWs.append(BW)

        b_row = np.tile(b, Wo).reshape(1, Wo * Cout)
        flat += Rs + BWs + [b_row]
        H, W = Ho, Wo

    assert H == 1 and W == 1, "conv stack must reduce spatially to 1x1 (pow2 input_res)"

    fc_w = np.asarray(fc_w, dtype=np.float32)          # (out, in)
    fc_b = np.asarray(fc_b, dtype=np.float32)
    gain = 1.0 / np.sqrt(fc_w.shape[1])
    flat.append(np.ascontiguousarray((fc_w * gain).T))  # fold gain once, pre-transpose
    flat.append(fc_b.reshape(1, -1).copy())
    return [jnp.asarray(p, dtype=jnp.float32) for p in flat], len(conv_params)


# --------------------------------------------------------------------------
# Forward pass (matches SimpleFeatMapToLatent.forward) -- one fused Pallas call.
# --------------------------------------------------------------------------
@functools.partial(jax.jit, static_argnums=(2, 3))
def simple_featmap_to_latent(x_nchw, fused_params, n_layers, z_dims):
    N, C, H, W = x_nchw.shape
    # glue: NCHW -> lane-dense (N*H, W*C) slab expected by the kernel
    x2d = jnp.transpose(x_nchw, (0, 2, 3, 1)).reshape(N * H, W * C)
    kernel = functools.partial(_fused_fwd_kernel, n_layers=n_layers)
    return pl.pallas_call(
        kernel,
        out_shape=jax.ShapeDtypeStruct((N, z_dims), x_nchw.dtype),
    )(x2d, *fused_params)


# --------------------------------------------------------------------------
# Parameter init (deterministic, mirrors the module's shapes)
# --------------------------------------------------------------------------
def init_params(key, input_res, input_nc, z_dims):
    n_down = int(np.log2(input_res))
    conv_params = []
    cin = input_nc
    for _ in range(n_down):
        key, kw_, kb_ = jax.random.split(key, 3)
        fan_in = cin * 9
        bound = 1.0 / np.sqrt(fan_in)   # ~ PyTorch Conv2d default init range
        w = jax.random.uniform(kw_, (3, 3, cin, z_dims), jnp.float32, -bound, bound)
        b = jax.random.uniform(kb_, (z_dims,), jnp.float32, -bound, bound)
        conv_params.append((w, b))
        cin = z_dims
    key, kfc = jax.random.split(key)
    fc_w = jax.random.normal(kfc, (z_dims, z_dims), jnp.float32)   # (out, in)
    fc_b = jnp.zeros((z_dims,), jnp.float32)
    return conv_params, fc_w, fc_b


# --------------------------------------------------------------------------
# Pure-JAX reference for verification
# --------------------------------------------------------------------------
def reference(x_nchw, conv_params, fc_w, fc_b, z_dims):
    x = x_nchw
    for w, b in conv_params:
        x = jax.lax.conv_general_dilated(
            x, w, window_strides=(2, 2), padding=((1, 1), (1, 1)),
            dimension_numbers=("NCHW", "HWIO", "NCHW"),
            precision=jax.lax.Precision.HIGHEST)
        x = x + b.reshape(1, -1, 1, 1)
        x = jnp.where(x >= 0, x, NEG_SLOPE * x)
    x = x.reshape(-1, z_dims)
    w_t = (fc_w * (1.0 / np.sqrt(fc_w.shape[1]))).T
    return jnp.dot(x, w_t, precision=jax.lax.Precision.HIGHEST) + fc_b


if __name__ == "__main__":
    input_res, input_nc, z_dims, batch = 16, 4, 32, 2
    key = jax.random.PRNGKey(0)
    key, kx = jax.random.split(key)
    x = jax.random.normal(kx, (batch, input_nc, input_res, input_res), jnp.float32)

    conv_params, fc_w, fc_b = init_params(key, input_res, input_nc, z_dims)
    fused_params, n_layers = build_fused_params(conv_params, fc_w, fc_b, input_res, batch)

    out = simple_featmap_to_latent(x, fused_params, n_layers, z_dims)
    out = jax.block_until_ready(out)

    ref = jax.block_until_ready(reference(x, conv_params, fc_w, fc_b, z_dims))
    assert out.shape == (batch, z_dims)
    np.testing.assert_allclose(np.asarray(out), np.asarray(ref), rtol=5e-3, atol=5e-3)
    print("KERNEL_OK")
</pallas_src>

<mosaic_0001>
module attributes {stable_mosaic.version = 11 : i64} {
  func.func @_fused_fwd_kernel(%arg0: memref<32x64xf32, #tpu.memory_space<vmem>>, %arg1: memref<16x32xf32, #tpu.memory_space<vmem>>, %arg2: memref<16x32xf32, #tpu.memory_space<vmem>>, %arg3: memref<16x32xf32, #tpu.memory_space<vmem>>, %arg4: memref<64x256xf32, #tpu.memory_space<vmem>>, %arg5: memref<64x256xf32, #tpu.memory_space<vmem>>, %arg6: memref<64x256xf32, #tpu.memory_space<vmem>>, %arg7: memref<1x256xf32, #tpu.memory_space<vmem>>, %arg8: memref<8x16xf32, #tpu.memory_space<vmem>>, %arg9: memref<8x16xf32, #tpu.memory_space<vmem>>, %arg10: memref<8x16xf32, #tpu.memory_space<vmem>>, %arg11: memref<256x128xf32, #tpu.memory_space<vmem>>, %arg12: memref<256x128xf32, #tpu.memory_space<vmem>>, %arg13: memref<256x128xf32, #tpu.memory_space<vmem>>, %arg14: memref<1x128xf32, #tpu.memory_space<vmem>>, %arg15: memref<4x8xf32, #tpu.memory_space<vmem>>, %arg16: memref<4x8xf32, #tpu.memory_space<vmem>>, %arg17: memref<4x8xf32, #tpu.memory_space<vmem>>, %arg18: memref<128x64xf32, #tpu.memory_space<vmem>>, %arg19: memref<128x64xf32, #tpu.memory_space<vmem>>, %arg20: memref<128x64xf32, #tpu.memory_space<vmem>>, %arg21: memref<1x64xf32, #tpu.memory_space<vmem>>, %arg22: memref<2x4xf32, #tpu.memory_space<vmem>>, %arg23: memref<2x4xf32, #tpu.memory_space<vmem>>, %arg24: memref<2x4xf32, #tpu.memory_space<vmem>>, %arg25: memref<64x32xf32, #tpu.memory_space<vmem>>, %arg26: memref<64x32xf32, #tpu.memory_space<vmem>>, %arg27: memref<64x32xf32, #tpu.memory_space<vmem>>, %arg28: memref<1x32xf32, #tpu.memory_space<vmem>>, %arg29: memref<32x32xf32, #tpu.memory_space<vmem>>, %arg30: memref<1x32xf32, #tpu.memory_space<vmem>>, %arg31: memref<2x32xf32, #tpu.memory_space<vmem>>) attributes {dimension_semantics = [], scalar_prefetch = 0 : i64, scratch_operands = 0 : i64, tpu.core_type = #tpu.core_type<tc>} {
    %c0 = arith.constant 0 : index
    %c0_0 = arith.constant 0 : index
    %0 = vector.load %arg0[%c0, %c0_0] : memref<32x64xf32, #tpu.memory_space<vmem>>, vector<32x64xf32>
    %c0_1 = arith.constant 0 : index
    %c0_2 = arith.constant 0 : index
    %1 = vector.load %arg1[%c0_1, %c0_2] : memref<16x32xf32, #tpu.memory_space<vmem>>, vector<16x32xf32>
    %cst = arith.constant dense<0.000000e+00> : vector<16x64xf32>
    %2 = tpu.matmul %1, %0, %cst {dimension_numbers = #tpu.dot_dimension_numbers<[1], [0], [0], [1], [0, 0, 1, 1], [], []>} : vector<16x32xf32>, vector<32x64xf32>, vector<16x64xf32> -> vector<16x64xf32>
    %c0_3 = arith.constant 0 : index
    %c0_4 = arith.constant 0 : index
    %3 = vector.load %arg4[%c0_3, %c0_4] : memref<64x256xf32, #tpu.memory_space<vmem>>, vector<64x256xf32>
    %cst_5 = arith.constant dense<0.000000e+00> : vector<16x256xf32>
    %4 = tpu.matmul %2, %3, %cst_5 {dimension_numbers = #tpu.dot_dimension_numbers<[1], [0], [0], [1], [0, 0, 1, 1], [], []>} : vector<16x64xf32>, vector<64x256xf32>, vector<16x256xf32> -> vector<16x256xf32>
    %c0_6 = arith.constant 0 : index
    %c0_7 = arith.constant 0 : index
    %5 = vector.load %arg2[%c0_6, %c0_7] : memref<16x32xf32, #tpu.memory_space<vmem>>, vector<16x32xf32>
    %cst_8 = arith.constant dense<0.000000e+00> : vector<16x64xf32>
    %6 = tpu.matmul %5, %0, %cst_8 {dimension_numbers = #tpu.dot_dimension_numbers<[1], [0], [0], [1], [0, 0, 1, 1], [], []>} : vector<16x32xf32>, vector<32x64xf32>, vector<16x64xf32> -> vector<16x64xf32>
    %c0_9 = arith.constant 0 : index
    %c0_10 = arith.constant 0 : index
    %7 = vector.load %arg5[%c0_9, %c0_10] : memref<64x256xf32, #tpu.memory_space<vmem>>, vector<64x256xf32>
    %cst_11 = arith.constant dense<0.000000e+00> : vector<16x256xf32>
    %8 = tpu.matmul %6, %7, %cst_11 {dimension_numbers = #tpu.dot_dimension_numbers<[1], [0], [0], [1], [0, 0, 1, 1], [], []>} : vector<16x64xf32>, vector<64x256xf32>, vector<16x256xf32> -> vector<16x256xf32>
    %9 = arith.addf %4, %8 : vector<16x256xf32>
    %c0_12 = arith.constant 0 : index
    %c0_13 = arith.constant 0 : index
    %10 = vector.load %arg3[%c0_12, %c0_13] : memref<16x32xf32, #tpu.memory_space<vmem>>, vector<16x32xf32>
    %cst_14 = arith.constant dense<0.000000e+00> : vector<16x64xf32>
    %11 = tpu.matmul %10, %0, %cst_14 {dimension_numbers = #tpu.dot_dimension_numbers<[1], [0], [0], [1], [0, 0, 1, 1], [], []>} : vector<16x32xf32>, vector<32x64xf32>, vector<16x64xf32> -> vector<16x64xf32>
    %c0_15 = arith.constant 0 : index
    %c0_16 = arith.constant 0 : index
    %12 = vector.load %arg6[%c0_15, %c0_16] : memref<64x256xf32, #tpu.memory_space<vmem>>, vector<64x256xf32>
    %cst_17 = arith.constant dense<0.000000e+00> : vector<16x256xf32>
    %13 = tpu.matmul %11, %12, %cst_17 {dimension_numbers = #tpu.dot_dimension_numbers<[1], [0], [0], [1], [0, 0, 1, 1], [], []>} : vector<16x64xf32>, vector<64x256xf32>, vector<16x256xf32> -> vector<16x256xf32>
    %14 = arith.addf %9, %13 : vector<16x256xf32>
    %c0_18 = arith.constant 0 : index
    %c0_19 = arith.constant 0 : index
    %15 = vector.load %arg7[%c0_18, %c0_19] : memref<1x256xf32, #tpu.memory_space<vmem>>, vector<1x256xf32>
    %16 = vector.broadcast %15 : vector<1x256xf32> to vector<16x256xf32>
    %17 = arith.addf %14, %16 : vector<16x256xf32>
    %cst_20 = arith.constant 0.000000e+00 : f32
    %18 = vector.broadcast %cst_20 : f32 to vector<16x256xf32>
    %19 = arith.cmpf oge, %17, %18 : vector<16x256xf32>
    %cst_21 = arith.constant 0.00999999977 : f32
    %20 = vector.broadcast %cst_21 : f32 to vector<16x256xf32>
    %21 = arith.mulf %20, %17 : vector<16x256xf32>
    %22 = arith.select %19, %17, %21 : vector<16x256xi1>, vector<16x256xf32>
    %c0_22 = arith.constant 0 : index
    %c0_23 = arith.constant 0 : index
    %23 = vector.load %arg8[%c0_22, %c0_23] : memref<8x16xf32, #tpu.memory_space<vmem>>, vector<8x16xf32>
    %cst_24 = arith.constant dense<0.000000e+00> : vector<8x256xf32>
    %24 = tpu.matmul %23, %22, %cst_24 {dimension_numbers = #tpu.dot_dimension_numbers<[1], [0], [0], [1], [0, 0, 1, 1], [], []>} : vector<8x16xf32>, vector<16x256xf32>, vector<8x256xf32> -> vector<8x256xf32>
    %c0_25 = arith.constant 0 : index
    %c0_26 = arith.constant 0 : index
    %25 = vector.load %arg11[%c0_25, %c0_26] : memref<256x128xf32, #tpu.memory_space<vmem>>, vector<256x128xf32>
    %cst_27 = arith.constant dense<0.000000e+00> : vector<8x128xf32>
    %26 = tpu.matmul %24, %25, %cst_27 {dimension_numbers = #tpu.dot_dimension_numbers<[1], [0], [0], [1], [0, 0, 1, 1], [], []>} : vector<8x256xf32>, vector<256x128xf32>, vector<8x128xf32> -> vector<8x128xf32>
    %c0_28 = arith.constant 0 : index
    %c0_29 = arith.constant 0 : index
    %27 = vector.load %arg9[%c0_28, %c0_29] : memref<8x16xf32, #tpu.memory_space<vmem>>, vector<8x16xf32>
    %cst_30 = arith.constant dense<0.000000e+00> : vector<8x256xf32>
    %28 = tpu.matmul %27, %22, %cst_30 {dimension_numbers = #tpu.dot_dimension_numbers<[1], [0], [0], [1], [0, 0, 1, 1], [], []>} : vector<8x16xf32>, vector<16x256xf32>, vector<8x256xf32> -> vector<8x256xf32>
    %c0_31 = arith.constant 0 : index
    %c0_32 = arith.constant 0 : index
    %29 = vector.load %arg12[%c0_31, %c0_32] : memref<256x128xf32, #tpu.memory_space<vmem>>, vector<256x128xf32>
    %cst_33 = arith.constant dense<0.000000e+00> : vector<8x128xf32>
    %30 = tpu.matmul %28, %29, %cst_33 {dimension_numbers = #tpu.dot_dimension_numbers<[1], [0], [0], [1], [0, 0, 1, 1], [], []>} : vector<8x256xf32>, vector<256x128xf32>, vector<8x128xf32> -> vector<8x128xf32>
    %31 = arith.addf %26, %30 : vector<8x128xf32>
    %c0_34 = arith.constant 0 : index
    %c0_35 = arith.constant 0 : index
    %32 = vector.load %arg10[%c0_34, %c0_35] : memref<8x16xf32, #tpu.memory_space<vmem>>, vector<8x16xf32>
    %cst_36 = arith.constant dense<0.000000e+00> : vector<8x256xf32>
    %33 = tpu.matmul %32, %22, %cst_36 {dimension_numbers = #tpu.dot_dimension_numbers<[1], [0], [0], [1], [0, 0, 1, 1], [], []>} : vector<8x16xf32>, vector<16x256xf32>, vector<8x256xf32> -> vector<8x256xf32>
    %c0_37 = arith.constant 0 : index
    %c0_38 = arith.constant 0 : index
    %34 = vector.load %arg13[%c0_37, %c0_38] : memref<256x128xf32, #tpu.memory_space<vmem>>, vector<256x128xf32>
    %cst_39 = arith.constant dense<0.000000e+00> : vector<8x128xf32>
    %35 = tpu.matmul %33, %34, %cst_39 {dimension_numbers = #tpu.dot_dimension_numbers<[1], [0], [0], [1], [0, 0, 1, 1], [], []>} : vector<8x256xf32>, vector<256x128xf32>, vector<8x128xf32> -> vector<8x128xf32>
    %36 = arith.addf %31, %35 : vector<8x128xf32>
    %c0_40 = arith.constant 0 : index
    %c0_41 = arith.constant 0 : index
    %37 = vector.load %arg14[%c0_40, %c0_41] : memref<1x128xf32, #tpu.memory_space<vmem>>, vector<1x128xf32>
    %38 = vector.broadcast %37 : vector<1x128xf32> to vector<8x128xf32>
    %39 = arith.addf %36, %38 : vector<8x128xf32>
    %cst_42 = arith.constant 0.000000e+00 : f32
    %40 = vector.broadcast %cst_42 : f32 to vector<8x128xf32>
    %41 = arith.cmpf oge, %39, %40 : vector<8x128xf32>
    %cst_43 = arith.constant 0.00999999977 : f32
    %42 = vector.broadcast %cst_43 : f32 to vector<8x128xf32>
    %43 = arith.mulf %42, %39 : vector<8x128xf32>
    %44 = arith.select %41, %39, %43 : vector<8x128xi1>, vector<8x128xf32>
    %c0_44 = arith.constant 0 : index
    %c0_45 = arith.constant 0 : index
    %45 = vector.load %arg15[%c0_44, %c0_45] : memref<4x8xf32, #tpu.memory_space<vmem>>, vector<4x8xf32>
    %cst_46 = arith.constant dense<0.000000e+00> : vector<4x128xf32>
    %46 = tpu.matmul %45, %44, %cst_46 {dimension_numbers = #tpu.dot_dimension_numbers<[1], [0], [0], [1], [0, 0, 1, 1], [], []>} : vector<4x8xf32>, vector<8x128xf32>, vector<4x128xf32> -> vector<4x128xf32>
    %c0_47 = arith.constant 0 : index
    %c0_48 = arith.constant 0 : index
    %47 = vector.load %arg18[%c0_47, %c0_48] : memref<128x64xf32, #tpu.memory_space<vmem>>, vector<128x64xf32>
    %cst_49 = arith.constant dense<0.000000e+00> : vector<4x64xf32>
    %48 = tpu.matmul %46, %47, %cst_49 {dimension_numbers = #tpu.dot_dimension_numbers<[1], [0], [0], [1], [0, 0, 1, 1], [], []>} : vector<4x128xf32>, vector<128x64xf32>, vector<4x64xf32> -> vector<4x64xf32>
    %c0_50 = arith.constant 0 : index
    %c0_51 = arith.constant 0 : index
    %49 = vector.load %arg16[%c0_50, %c0_51] : memref<4x8xf32, #tpu.memory_space<vmem>>, vector<4x8xf32>
    %cst_52 = arith.constant dense<0.000000e+00> : vector<4x128xf32>
    %50 = tpu.matmul %49, %44, %cst_52 {dimension_numbers = #tpu.dot_dimension_numbers<[1], [0], [0], [1], [0, 0, 1, 1], [], []>} : vector<4x8xf32>, vector<8x128xf32>, vector<4x128xf32> -> vector<4x128xf32>
    %c0_53 = arith.constant 0 : index
    %c0_54 = arith.constant 0 : index
    %51 = vector.load %arg19[%c0_53, %c0_54] : memref<128x64xf32, #tpu.memory_space<vmem>>, vector<128x64xf32>
    %cst_55 = arith.constant dense<0.000000e+00> : vector<4x64xf32>
    %52 = tpu.matmul %50, %51, %cst_55 {dimension_numbers = #tpu.dot_dimension_numbers<[1], [0], [0], [1], [0, 0, 1, 1], [], []>} : vector<4x128xf32>, vector<128x64xf32>, vector<4x64xf32> -> vector<4x64xf32>
    %53 = arith.addf %48, %52 : vector<4x64xf32>
    %c0_56 = arith.constant 0 : index
    %c0_57 = arith.constant 0 : index
    %54 = vector.load %arg17[%c0_56, %c0_57] : memref<4x8xf32, #tpu.memory_space<vmem>>, vector<4x8xf32>
    %cst_58 = arith.constant dense<0.000000e+00> : vector<4x128xf32>
    %55 = tpu.matmul %54, %44, %cst_58 {dimension_numbers = #tpu.dot_dimension_numbers<[1], [0], [0], [1], [0, 0, 1, 1], [], []>} : vector<4x8xf32>, vector<8x128xf32>, vector<4x128xf32> -> vector<4x128xf32>
    %c0_59 = arith.constant 0 : index
    %c0_60 = arith.constant 0 : index
    %56 = vector.load %arg20[%c0_59, %c0_60] : memref<128x64xf32, #tpu.memory_space<vmem>>, vector<128x64xf32>
    %cst_61 = arith.constant dense<0.000000e+00> : vector<4x64xf32>
    %57 = tpu.matmul %55, %56, %cst_61 {dimension_numbers = #tpu.dot_dimension_numbers<[1], [0], [0], [1], [0, 0, 1, 1], [], []>} : vector<4x128xf32>, vector<128x64xf32>, vector<4x64xf32> -> vector<4x64xf32>
    %58 = arith.addf %53, %57 : vector<4x64xf32>
    %c0_62 = arith.constant 0 : index
    %c0_63 = arith.constant 0 : index
    %59 = vector.load %arg21[%c0_62, %c0_63] : memref<1x64xf32, #tpu.memory_space<vmem>>, vector<1x64xf32>
    %60 = vector.broadcast %59 : vector<1x64xf32> to vector<4x64xf32>
    %61 = arith.addf %58, %60 : vector<4x64xf32>
    %cst_64 = arith.constant 0.000000e+00 : f32
    %62 = vector.broadcast %cst_64 : f32 to vector<4x64xf32>
    %63 = arith.cmpf oge, %61, %62 : vector<4x64xf32>
    %cst_65 = arith.constant 0.00999999977 : f32
    %64 = vector.broadcast %cst_65 : f32 to vector<4x64xf32>
    %65 = arith.mulf %64, %61 : vector<4x64xf32>
    %66 = arith.select %63, %61, %65 : vector<4x64xi1>, vector<4x64xf32>
    %c0_66 = arith.constant 0 : index
    %c0_67 = arith.constant 0 : index
    %67 = vector.load %arg22[%c0_66, %c0_67] : memref<2x4xf32, #tpu.memory_space<vmem>>, vector<2x4xf32>
    %cst_68 = arith.constant dense<0.000000e+00> : vector<2x64xf32>
    %68 = tpu.matmul %67, %66, %cst_68 {dimension_numbers = #tpu.dot_dimension_numbers<[1], [0], [0], [1], [0, 0, 1, 1], [], []>} : vector<2x4xf32>, vector<4x64xf32>, vector<2x64xf32> -> vector<2x64xf32>
    %c0_69 = arith.constant 0 : index
    %c0_70 = arith.constant 0 : index
    %69 = vector.load %arg25[%c0_69, %c0_70] : memref<64x32xf32, #tpu.memory_space<vmem>>, vector<64x32xf32>
    %cst_71 = arith.constant dense<0.000000e+00> : vector<2x32xf32>
    %70 = tpu.matmul %68, %69, %cst_71 {dimension_numbers = #tpu.dot_dimension_numbers<[1], [0], [0], [1], [0, 0, 1, 1], [], []>} : vector<2x64xf32>, vector<64x32xf32>, vector<2x32xf32> -> vector<2x32xf32>
    %c0_72 = arith.constant 0 : index
    %c0_73 = arith.constant 0 : index
    %71 = vector.load %arg23[%c0_72, %c0_73] : memref<2x4xf32, #tpu.memory_space<vmem>>, vector<2x4xf32>
    %cst_74 = arith.constant dense<0.000000e+00> : vector<2x64xf32>
    %72 = tpu.matmul %71, %66, %cst_74 {dimension_numbers = #tpu.dot_dimension_numbers<[1], [0], [0], [1], [0, 0, 1, 1], [], []>} : vector<2x4xf32>, vector<4x64xf32>, vector<2x64xf32> -> vector<2x64xf32>
    %c0_75 = arith.constant 0 : index
    %c0_76 = arith.constant 0 : index
    %73 = vector.load %arg26[%c0_75, %c0_76] : memref<64x32xf32, #tpu.memory_space<vmem>>, vector<64x32xf32>
    %cst_77 = arith.constant dense<0.000000e+00> : vector<2x32xf32>
    %74 = tpu.matmul %72, %73, %cst_77 {dimension_numbers = #tpu.dot_dimension_numbers<[1], [0], [0], [1], [0, 0, 1, 1], [], []>} : vector<2x64xf32>, vector<64x32xf32>, vector<2x32xf32> -> vector<2x32xf32>
    %75 = arith.addf %70, %74 : vector<2x32xf32>
    %c0_78 = arith.constant 0 : index
    %c0_79 = arith.constant 0 : index
    %76 = vector.load %arg24[%c0_78, %c0_79] : memref<2x4xf32, #tpu.memory_space<vmem>>, vector<2x4xf32>
    %cst_80 = arith.constant dense<0.000000e+00> : vector<2x64xf32>
    %77 = tpu.matmul %76, %66, %cst_80 {dimension_numbers = #tpu.dot_dimension_numbers<[1], [0], [0], [1], [0, 0, 1, 1], [], []>} : vector<2x4xf32>, vector<4x64xf32>, vector<2x64xf32> -> vector<2x64xf32>
    %c0_81 = arith.constant 0 : index
    %c0_82 = arith.constant 0 : index
    %78 = vector.load %arg27[%c0_81, %c0_82] : memref<64x32xf32, #tpu.memory_space<vmem>>, vector<64x32xf32>
    %cst_83 = arith.constant dense<0.000000e+00> : vector<2x32xf32>
    %79 = tpu.matmul %77, %78, %cst_83 {dimension_numbers = #tpu.dot_dimension_numbers<[1], [0], [0], [1], [0, 0, 1, 1], [], []>} : vector<2x64xf32>, vector<64x32xf32>, vector<2x32xf32> -> vector<2x32xf32>
    %80 = arith.addf %75, %79 : vector<2x32xf32>
    %c0_84 = arith.constant 0 : index
    %c0_85 = arith.constant 0 : index
    %81 = vector.load %arg28[%c0_84, %c0_85] : memref<1x32xf32, #tpu.memory_space<vmem>>, vector<1x32xf32>
    %82 = vector.broadcast %81 : vector<1x32xf32> to vector<2x32xf32>
    %83 = arith.addf %80, %82 : vector<2x32xf32>
    %cst_86 = arith.constant 0.000000e+00 : f32
    %84 = vector.broadcast %cst_86 : f32 to vector<2x32xf32>
    %85 = arith.cmpf oge, %83, %84 : vector<2x32xf32>
    %cst_87 = arith.constant 0.00999999977 : f32
    %86 = vector.broadcast %cst_87 : f32 to vector<2x32xf32>
    %87 = arith.mulf %86, %83 : vector<2x32xf32>
    %88 = arith.select %85, %83, %87 : vector<2x32xi1>, vector<2x32xf32>
    %c0_88 = arith.constant 0 : index
    %c0_89 = arith.constant 0 : index
    %89 = vector.load %arg29[%c0_88, %c0_89] : memref<32x32xf32, #tpu.memory_space<vmem>>, vector<32x32xf32>
    %cst_90 = arith.constant dense<0.000000e+00> : vector<2x32xf32>
    %90 = tpu.matmul %88, %89, %cst_90 {dimension_numbers = #tpu.dot_dimension_numbers<[1], [0], [0], [1], [0, 0, 1, 1], [], []>} : vector<2x32xf32>, vector<32x32xf32>, vector<2x32xf32> -> vector<2x32xf32>
    %c0_91 = arith.constant 0 : index
    %c0_92 = arith.constant 0 : index
    %91 = vector.load %arg30[%c0_91, %c0_92] : memref<1x32xf32, #tpu.memory_space<vmem>>, vector<1x32xf32>
    %92 = vector.broadcast %91 : vector<1x32xf32> to vector<2x32xf32>
    %93 = arith.addf %90, %92 : vector<2x32xf32>
    %c0_93 = arith.constant 0 : index
    %c0_94 = arith.constant 0 : index
    %94 = vector.load %arg31[%c0_93, %c0_94] : memref<2x32xf32, #tpu.memory_space<vmem>>, vector<2x32xf32>
    tpu.vector_store %arg31[%c0_93, %c0_94], %93 {strides = array<i32>} : memref<2x32xf32, #tpu.memory_space<vmem>>, vector<2x32xf32>,
    return
  }
}

</mosaic_0001>

<bundles_post_ra>
// kernel: simple_featmap_to_latent.1
= control target key start
LH: loop header
LB: loop body
LE: loop exit
PB: predicated region body
PF: predicated region fallthrough
CT: control target
= control target key end

     0   :  { %s3584_s6 = smov 1   ;;  %s3585_s10 = smov 2   ;;  %s4206_s0 = inlined_call_operand.smem [shape: u32[32], index: -1, kind: input, shape index: {}] }
   0x1   :  { %s3639_s5 = sld [smem:[%s4206_s0]]   ;;  %s3586_s14 = smov 3  }
   0x2   :  { %s3644_s9 = sld [smem:[%s4206_s0 + %s3584_s6]]   ;;  %s3587_s18 = smov 4  }
   0x3   :  { %s3649_s13 = sld [smem:[%s4206_s0 + %s3585_s10]]   ;;  %s3588_s22 = smov 5  }
   0x4   :  { %s3654_s17 = sld [smem:[%s4206_s0 + %s3586_s14]]   ;;  %s3589_s26 = smov 6  }
   0x5   :  { %s3659_s21 = sld [smem:[%s4206_s0 + %s3587_s18]]   ;;  %s3590_s30 = smov 7  }
   0x6   :  { %s3664_s25 = sld [smem:[%s4206_s0 + %s3588_s22]]   ;;  %s3591_s4 = smov 8  }
   0x7   :  { %s3669_s29 = sld [smem:[%s4206_s0 + %s3589_s26]]   ;;  %s3592_s10 = smov 9  }
   0x8   :  { %s3674_s3 = sld [smem:[%s4206_s0 + %s3590_s30]]   ;;  %s3593_s15 = smov 10  }
   0x9   :  { %s3679_s8 = sld [smem:[%s4206_s0 + %s3591_s4]]   ;;  %s3594_s20 = smov 11  }
   0xa   :  { %s3684_s14 = sld [smem:[%s4206_s0 + %s3592_s10]]   ;;  %s3595_s26 = smov 12  }
   0xb   :  { %s3689_s19 = sld [smem:[%s4206_s0 + %s3593_s15]]   ;;  %s3596_s1 = smov 13  }
   0xc   :  { %s3694_s24 = sld [smem:[%s4206_s0 + %s3594_s20]]   ;;  %s3597_s7 = smov 14  }
   0xd   :  { %s3699_s30 = sld [smem:[%s4206_s0 + %s3595_s26]]   ;;  %s3598_s15 = smov 15  }
   0xe   :  { %4216 = sst [smem:[#allocation27_spill]] %s3674_s3  ;;  %s3599_s22 = smov 16  }
   0xf   :  { %4217 = sst [smem:[#allocation28_spill]] %s3679_s8  ;;  %s3600_s28 = smov 17  }
  0x10   :  { %s3704_s6 = sld [smem:[%s4206_s0 + %s3596_s1]]  }
  0x11   :  { %s3709_s12 = sld [smem:[%s4206_s0 + %s3597_s7]]   ;;  %s3601_s7 = smov 18  }
  0x12   :  { %4218 = sst [smem:[#allocation29_spill]] %s3694_s24 }
  0x13   :  { %4219 = sst [smem:[#allocation30_spill]] %s3699_s30 }
  0x14   :  { %s3714_s20 = sld [smem:[%s4206_s0 + %s3598_s15]]   ;;  %s3602_s15 = smov 19  }
  0x15   :  { %s3719_s27 = sld [smem:[%s4206_s0 + %s3599_s22]]   ;;  %s3603_s22 = smov 20  }
  0x16   :  { %4220 = sst [smem:[#allocation31_spill]] %s3704_s6 }
  0x17   :  { %4221 = sst [smem:[#allocation32_spill]] %s3709_s12 }
  0x18   :  { %s3724_s4 = sld [smem:[%s4206_s0 + %s3600_s28]]   ;;  %s3604_s28 = smov 21  }
  0x19   :  { %s3729_s12 = sld [smem:[%s4206_s0 + %s3601_s7]]   ;;  %s3605_s7 = smov 22  }
  0x1a   :  { %s3734_s6 = sld [smem:[%s4206_s0 + %s3602_s15]]   ;;  %s3606_s15 = smov 23  }
  0x1b   :  { %s3739_s8 = sld [smem:[%s4206_s0 + %s3603_s22]]   ;;  %s3607_s22 = smov 24  }
  0x1c   :  { %s3744_s30 = sld [smem:[%s4206_s0 + %s3604_s28]]   ;;  %s3608_s28 = smov 25  }
  0x1d   :  { %s3764_s3 = sld [smem:[%s4206_s0 + %s3608_s28]]   ;;  %s3612_s28 = smov 29  }
  0x1f   :  { %4222 = sst [smem:[#allocation33_spill]] %s3729_s12 }
  0x20   :  { %4223 = sst [smem:[#allocation34_spill]] %s3734_s6 }
  0x21   :  { %4224 = sst [smem:[#allocation35_spill]] %s3739_s8 }
  0x22   :  { %s3749_s12 = sld [smem:[%s4206_s0 + %s3605_s7]]   ;;  %s3609_s7 = smov 26  }
  0x23   :  { %s3754_s6 = sld [smem:[%s4206_s0 + %s3606_s15]]   ;;  %s3610_s15 = smov 27  }
  0x24   :  { %s3759_s8 = sld [smem:[%s4206_s0 + %s3607_s22]]   ;;  %s3611_s22 = smov 28  }
  0x25   :  { %4227 = sst [smem:[#allocation38_spill]] %s3764_s3 }
  0x26   :  { %s3769_s24 = sld [smem:[%s4206_s0 + %s3609_s7]]   ;;  %s3613_s7 = smov 30  }
  0x27   :  { %s3784_s3 = sld [smem:[%s4206_s0 + %s3612_s28]]  }
  0x29   :  { %4225 = sst [smem:[#allocation36_spill]] %s3754_s6 }
  0x2a   :  { %4226 = sst [smem:[#allocation37_spill]] %s3759_s8 }
  0x2b   :  { %s3774_s6 = sld [smem:[%s4206_s0 + %s3610_s15]]   ;;  %s3614_s15 = smov 31  }
  0x2c   :  { %4228 = sst [smem:[#allocation39_spill]] %s3769_s24 }
  0x2d   :  { %s3779_s8 = sld [smem:[%s4206_s0 + %s3611_s22]]  }
  0x2e   :  { %s3789_s24 = sld [smem:[%s4206_s0 + %s3613_s7]]  }
  0x31   :  { %4229 = sst [smem:[#allocation40_spill]] %s3774_s6 }
  0x32   :  { %s3794_s6 = sld [smem:[%s4206_s0 + %s3614_s15]]  }
  0x33   :  { %68 = vsyncpa [#allocation3], 0 }
  0x34   :  { %69 = vsyncpa [#allocation6], 0 }
  0x35   :  { %70 = vsyncpa [#allocation9], 0 }
  0x36   :  { %71 = vsyncpa [#allocation12], 0 }
  0x37   :  { %72 = vsyncpa [#allocation15], 0 }
  0x38   :  { %73 = vsyncpa [#allocation18], 0 }
  0x39   :  { %74 = vsyncpa [#allocation4], 0  ;;  %s3615_s22 = smov [#allocation5]   ;;  %s3616_s26 = smov [#allocation8]  }
  0x3a   :  { %s94_s23 = sshll.u32 %s3615_s22, 4  ;;  %s129_s28 = sshll.u32 %s3616_s26, 4  ;;  %s95_s23 = int_to_ptr.vmem [resolvable:$true] %s94_s23  ;;  %s130_s28 = int_to_ptr.vmem [resolvable:$true] %s129_s28 }
  0x3b   :  { %s3328_s1 = scalar_lea.hbm %s3649_s13, 256 }
  0x3c   :  { %p3329_p0 = scmp.ne.s32.totalorder %s3649_s13, %s3328_s1  ;;  %p3332_p1 = scmp.lt.u32.totalorder %s3328_s1, %s3649_s13 }
  0x3e   :  { %p3334_p2 = pnand %p3332_p1, %p3329_p0 }
  0x40   :  { %3337 = shalt.err (!%p3334_p2)
}
  0x41   :  { %s3338_s0 = scalar_lea.vmem %s95_s23, 256  ;;  %p3343_p4 = scmp.lt.s32.totalorder %s95_s23, %s95_s23 }
  0x42   :  { %p3339_p3 = scmp.ne.s32.totalorder %s95_s23, %s3338_s0  ;;  %p3344_p5 = scmp.lt.s32.totalorder %s3338_s0, %s3338_s0 }
  0x44   :  { %p3345_p6 = por %p3344_p5, %p3343_p4 }
  0x46   :  { %p3346_p7 = pnand %p3345_p6, %p3339_p3 }
  0x48   :  { %3349 = shalt.err (!%p3346_p7)
}
  0x49   :  { %s3617_s2 = smov 128   ;;  %s3618_s7 = smov 8  }
  0x4a   :  { %100 = dma.hbm_to_vmem [thread:$0]  %s3649_s13, 256, %s95_s23, [#allocation6], %s3617_s2, %s3617_s2, %s3618_s7  }
  0x4b   :  { %s3350_s10 = scalar_lea.hbm %s3684_s14, 128 }
  0x4c   :  { %p3351_p8 = scmp.ne.s32.totalorder %s3684_s14, %s3350_s10  ;;  %p3354_p9 = scmp.lt.u32.totalorder %s3350_s10, %s3684_s14 }
  0x4e   :  { %p3356_p10 = pnand %p3354_p9, %p3351_p8 }
  0x50   :  { %3359 = shalt.err (!%p3356_p10)
}
  0x51   :  { %s3360_s11 = scalar_lea.vmem %s130_s28, 128  ;;  %p3365_p12 = scmp.lt.s32.totalorder %s130_s28, %s130_s28 }
  0x52   :  { %p3361_p11 = scmp.ne.s32.totalorder %s130_s28, %s3360_s11  ;;  %p3366_p13 = scmp.lt.s32.totalorder %s3360_s11, %s3360_s11 }
  0x54   :  { %p3367_p0 = por %p3366_p13, %p3365_p12 }
  0x56   :  { %p3368_p1 = pnand %p3367_p0, %p3361_p11 }
  0x58   :  { %3371 = shalt.err (!%p3368_p1)
}
  0x59   :  { %132 = dma.hbm_to_vmem [thread:$0]  %s3684_s14, 128, %s130_s28, [#allocation9]  }
  0x5a   :  { %s3619_s15 = smov [#allocation11]   ;;  %s3620_s13 = smov [#allocation14]  }
  0x5b   :  { %s157_s16 = sshll.u32 %s3619_s15, 4  ;;  %s177_s18 = sshll.u32 %s3620_s13, 4  ;;  %s158_s16 = int_to_ptr.vmem [resolvable:$true] %s157_s16  ;;  %s178_s18 = int_to_ptr.vmem [resolvable:$true] %s177_s18 }
  0x5c   :  { %s3372_s22 = scalar_lea.hbm %s3714_s20, 64 }
  0x5d   :  { %p3373_p2 = scmp.ne.s32.totalorder %s3714_s20, %s3372_s22  ;;  %p3376_p3 = scmp.lt.u32.totalorder %s3372_s22, %s3714_s20 }
  0x5f   :  { %p3378_p4 = pnand %p3376_p3, %p3373_p2 }
  0x61   :  { %3381 = shalt.err (!%p3378_p4)
}
  0x62   :  { %s3382_s23 = scalar_lea.vmem %s158_s16, 64  ;;  %p3387_p6 = scmp.lt.s32.totalorder %s158_s16, %s158_s16 }
  0x63   :  { %p3383_p5 = scmp.ne.s32.totalorder %s158_s16, %s3382_s23  ;;  %p3388_p7 = scmp.lt.s32.totalorder %s3382_s23, %s3382_s23 }
  0x65   :  { %p3389_p8 = por %p3388_p7, %p3387_p6 }
  0x67   :  { %p3390_p9 = pnand %p3389_p8, %p3383_p5 }
  0x69   :  { %3393 = shalt.err (!%p3390_p9)
}
  0x6a   :  { %160 = dma.hbm_to_vmem [thread:$0]  %s3714_s20, 64, %s158_s16, [#allocation12]  }
  0x6b   :  { %s3394_s14 = scalar_lea.hbm %s3724_s4, 64 }
  0x6c   :  { %p3395_p10 = scmp.ne.s32.totalorder %s3724_s4, %s3394_s14  ;;  %p3398_p11 = scmp.lt.u32.totalorder %s3394_s14, %s3724_s4 }
  0x6e   :  { %p3400_p12 = pnand %p3398_p11, %p3395_p10 }
  0x70   :  { %3403 = shalt.err (!%p3400_p12)
}
  0x71   :  { %s3404_s26 = scalar_lea.vmem %s178_s18, 64  ;;  %p3409_p0 = scmp.lt.s32.totalorder %s178_s18, %s178_s18 }
  0x72   :  { %p3405_p13 = scmp.ne.s32.totalorder %s178_s18, %s3404_s26  ;;  %p3410_p1 = scmp.lt.s32.totalorder %s3404_s26, %s3404_s26 }
  0x74   :  { %p3411_p2 = por %p3410_p1, %p3409_p0 }
  0x76   :  { %p3412_p3 = pnand %p3411_p2, %p3405_p13 }
  0x78   :  { %3415 = shalt.err (!%p3412_p3)
}
  0x79   :  { %180 = dma.hbm_to_vmem [thread:$0]  %s3724_s4, 64, %s178_s18, [#allocation15]  }
  0x7a   :  { %s3621_s28 = smov [#allocation2]   ;;  %s3622_s20 = smov [#allocation7]  }
  0x7b   :  { %s82_s1 = sshll.u32 %s3621_s28, 4  ;;  %s106_s0 = sshll.u32 %s3622_s20, 4  ;;  %s83_s1 = int_to_ptr.vmem [resolvable:$true] %s82_s1  ;;  %s3815_s0 = int_to_ptr.vmem [resolvable:$true] %s106_s0 }
  0x7c   :  { %s3416_s10 = scalar_lea.hbm %s3644_s9, 256 }
  0x7d   :  { %p3417_p4 = scmp.ne.s32.totalorder %s3644_s9, %s3416_s10  ;;  %p3420_p5 = scmp.lt.u32.totalorder %s3416_s10, %s3644_s9 }
  0x7f   :  { %p3422_p6 = pnand %p3420_p5, %p3417_p4 }
  0x81   :  { %3425 = shalt.err (!%p3422_p6)
}
  0x82   :  { %s3426_s11 = scalar_lea.vmem %s83_s1, 256  ;;  %p3431_p8 = scmp.lt.s32.totalorder %s83_s1, %s83_s1 }
  0x83   :  { %p3427_p7 = scmp.ne.s32.totalorder %s83_s1, %s3426_s11  ;;  %p3432_p9 = scmp.lt.s32.totalorder %s3426_s11, %s3426_s11 }
  0x85   :  { %p3433_p10 = por %p3432_p9, %p3431_p8 }
  0x87   :  { %p3434_p11 = pnand %p3433_p10, %p3427_p7 }
  0x89   :  { %3437 = shalt.err (!%p3434_p11)
}
  0x8a   :  { %88 = dma.hbm_to_vmem [thread:$0]  %s3644_s9, 256, %s83_s1, [#allocation3], %s3617_s2, %s3617_s2, %s3618_s7  }
  0x8b   :  { %s3438_s4 = scalar_lea.hbm %s3654_s17, 256 }
  0x8c   :  { %p3439_p12 = scmp.ne.s32.totalorder %s3654_s17, %s3438_s4  ;;  %p3442_p13 = scmp.lt.u32.totalorder %s3438_s4, %s3654_s17 }
  0x8e   :  { %p3444_p0 = pnand %p3442_p13, %p3439_p12 }
  0x90   :  { %3447 = shalt.err (!%p3444_p0)
}
  0x91   :  { %s3448_s15 = scalar_lea.vmem %s3815_s0, 256  ;;  %p3453_p2 = scmp.lt.s32.totalorder %s3815_s0, %s3815_s0 }
  0x92   :  { %p3449_p1 = scmp.ne.s32.totalorder %s3815_s0, %s3448_s15  ;;  %p3454_p3 = scmp.lt.s32.totalorder %s3448_s15, %s3448_s15 }
  0x94   :  { %p3455_p4 = por %p3454_p3, %p3453_p2 }
  0x96   :  { %p3456_p5 = pnand %p3455_p4, %p3449_p1 }
  0x98   :  { %3459 = shalt.err (!%p3456_p5)
}
  0x99   :  { %112 = dma.hbm_to_vmem [thread:$0]  %s3654_s17, 256, %s3815_s0, [#allocation6], %s3617_s2, %s3617_s2, %s3618_s7  }
  0x9a   :  { %s3623_s9 = smov [#allocation10]   ;;  %s3624_s13 = smov [#allocation13]  }
  0x9b   :  { %s139_s16 = sshll.u32 %s3623_s9, 4  ;;  %s167_s18 = sshll.u32 %s3624_s13, 4  ;;  %s140_s16 = int_to_ptr.vmem [resolvable:$true] %s139_s16  ;;  %s168_s18 = int_to_ptr.vmem [resolvable:$true] %s167_s18 }
  0x9c   :  { %s3460_s22 = scalar_lea.hbm %s3689_s19, 128 }
  0x9d   :  { %p3461_p6 = scmp.ne.s32.totalorder %s3689_s19, %s3460_s22  ;;  %p3464_p7 = scmp.lt.u32.totalorder %s3460_s22, %s3689_s19 }
  0x9f   :  { %p3466_p8 = pnand %p3464_p7, %p3461_p6 }
  0xa1   :  { %3469 = shalt.err (!%p3466_p8)
}
  0xa2   :  { %s3470_s23 = scalar_lea.vmem %s140_s16, 128  ;;  %p3475_p10 = scmp.lt.s32.totalorder %s140_s16, %s140_s16 }
  0xa3   :  { %p3471_p9 = scmp.ne.s32.totalorder %s140_s16, %s3470_s23  ;;  %p3476_p11 = scmp.lt.s32.totalorder %s3470_s23, %s3470_s23 }
  0xa5   :  { %p3477_p12 = por %p3476_p11, %p3475_p10 }
  0xa7   :  { %p3478_p13 = pnand %p3477_p12, %p3471_p9 }
  0xa9   :  { %3481 = shalt.err (!%p3478_p13)
}
  0xaa   :  { %142 = dma.hbm_to_vmem [thread:$0]  %s3689_s19, 128, %s140_s16, [#allocation9]  }
  0xab   :  { %s3482_s17 = scalar_lea.hbm %s3719_s27, 64 }
  0xac   :  { %p3483_p0 = scmp.ne.s32.totalorder %s3719_s27, %s3482_s17  ;;  %p3486_p1 = scmp.lt.u32.totalorder %s3482_s17, %s3719_s27 }
  0xae   :  { %p3488_p2 = pnand %p3486_p1, %p3483_p0 }
  0xb0   :  { %3491 = shalt.err (!%p3488_p2)
}
  0xb1   :  { %s3492_s2 = scalar_lea.vmem %s168_s18, 64  ;;  %p3497_p4 = scmp.lt.s32.totalorder %s168_s18, %s168_s18 }
  0xb2   :  { %p3493_p3 = scmp.ne.s32.totalorder %s168_s18, %s3492_s2  ;;  %p3498_p5 = scmp.lt.s32.totalorder %s3492_s2, %s3492_s2 }
  0xb4   :  { %p3499_p6 = por %p3498_p5, %p3497_p4 }
  0xb6   :  { %p3500_p7 = pnand %p3499_p6, %p3493_p3 }
  0xb8   :  { %3503 = shalt.err (!%p3500_p7)
}
  0xb9   :  { %170 = dma.hbm_to_vmem [thread:$0]  %s3719_s27, 64, %s168_s18, [#allocation12]  }
  0xba   :  { %s3625_s7 = smov [#allocation16]   ;;  %s3626_s19 = smov [#allocation17]  }
  0xbb   :  { %s193_s14 = sshll.u32 %s3625_s7, 4  ;;  %s203_s26 = sshll.u32 %s3626_s19, 4  ;;  %s194_s14 = int_to_ptr.vmem [resolvable:$true] %s193_s14  ;;  %s204_s26 = int_to_ptr.vmem [resolvable:$true] %s203_s26 }
  0xbc   :  { %s3504_s28 = scalar_lea.hbm %s3744_s30, 16 }
  0xbd   :  { %p3505_p8 = scmp.ne.s32.totalorder %s3744_s30, %s3504_s28  ;;  %p3508_p9 = scmp.lt.u32.totalorder %s3504_s28, %s3744_s30 }
  0xbf   :  { %p3510_p10 = pnand %p3508_p9, %p3505_p8 }
  0xc1   :  { %3513 = shalt.err (!%p3510_p10)
}
  0xc2   :  { %s3514_s1 = scalar_lea.vmem %s194_s14, 16  ;;  %s3518_s20 = scalar_lea.vmem %s194_s14, 32 }
  0xc3   :  { %p3515_p11 = scmp.ne.s32.totalorder %s194_s14, %s3514_s1  ;;  %p3519_p12 = scmp.lt.s32.totalorder %s194_s14, %s194_s14 }
  0xc4   :  { %p3520_p13 = scmp.lt.s32.totalorder %s3518_s20, %s3514_s1 }
  0xc6   :  { %p3521_p0 = por %p3520_p13, %p3519_p12 }
  0xc8   :  { %p3522_p1 = pnand %p3521_p0, %p3515_p11 }
  0xca   :  { %3525 = shalt.err (!%p3522_p1)
}
  0xcb   :  { %196 = dma.hbm_to_vmem [thread:$0]  %s3744_s30, 16, %s194_s14, [#allocation15]  }
  0xcc   :  { %s3526_s27 = scalar_lea.hbm %s3749_s12, 32 }
  0xcd   :  { %p3527_p2 = scmp.ne.s32.totalorder %s3749_s12, %s3526_s27  ;;  %p3530_p3 = scmp.lt.u32.totalorder %s3526_s27, %s3749_s12 }
  0xcf   :  { %p3532_p4 = pnand %p3530_p3, %p3527_p2 }
  0xd1   :  { %3535 = shalt.err (!%p3532_p4)
}
  0xd2   :  { %s3536_s0 = scalar_lea.vmem %s204_s26, 32  ;;  %p3541_p6 = scmp.lt.s32.totalorder %s204_s26, %s204_s26 }
  0xd3   :  { %p3537_p5 = scmp.ne.s32.totalorder %s204_s26, %s3536_s0  ;;  %p3542_p7 = scmp.lt.s32.totalorder %s3536_s0, %s3536_s0 }
  0xd5   :  { %p3543_p8 = por %p3542_p7, %p3541_p6 }
  0xd7   :  { %p3544_p9 = pnand %p3543_p8, %p3537_p5 }
  0xd9   :  { %3547 = shalt.err (!%p3544_p9)
}
  0xda   :  { %206 = dma.hbm_to_vmem [thread:$0]  %s3749_s12, 32, %s204_s26, [#allocation18]  }
  0xdb   :  { %3570 = dma.done.wait [#allocation3], 256  }
  0xdc   :  { %3571 = vsyncadd [#allocation3], 4294967040 }
  0xdd   :  { %3572 = dma.done.wait [#allocation6], 512  }
  0xde   :  { %3573 = vsyncadd [#allocation6], 4294966784 }
  0xdf   :  { %3574 = dma.done.wait [#allocation9], 256  }
  0xe0   :  { %3575 = vsyncadd [#allocation9], 4294967040 }
  0xe1   :  { %3576 = dma.done.wait [#allocation12], 128  }
  0xe2   :  { %3577 = vsyncadd [#allocation12], 4294967168 }
  0xe3   :  { %3578 = dma.done.wait [#allocation15], 80  }
  0xe4   :  { %3579 = vsyncadd [#allocation15], 4294967216 }
  0xe5   :  { %3580 = dma.done.wait [#allocation18], 32  }
  0xe6   :  { %3581 = vsyncadd [#allocation18], 4294967264  ;;  %vm259_vm0 = vcmask 261120   ;;  %v253_v0 = vld [vmem:[%s3639_s5] sm:$0xff]  ;;  %v254_v1 = vld [vmem:[%s3639_s5 + $0x8] sm:$0xff]  ;;  %v3627_v39 = vmov 0.0  }
  0xe7   :  { %v255_v2 = vld [vmem:[%s3639_s5 + $0x10] sm:$0xff]  ;;  %v2979_v3 = vpack.c.bf16 %v254_v1, %v253_v0  ;;  %v256_v4 = vld [vmem:[%s3639_s5 + $0x18] sm:$0xff]  ;;  %v257_v7 = vld [vmem:[#allocation2] sm:$0xff]  ;;  %vm456_vm1 = vcmask 523264   ;;  %s4230_s5 = sld [smem:[#allocation29_spill]]  ;;  %vm838_vm6 = vcmask 130048  }
  0xe8   :  { %v357_v5 = vld [vmem:[#allocation5] sm:$0xff]  ;;  %v2983_v6 = vpack.c.bf16 %v256_v4, %v255_v2  ;;  %v441_v8 = vld [vmem:[%s3664_s25 + $0x8] sm:$0xff]  ;;  %v443_v9 = vld [vmem:[%s3664_s25 + $0x18] sm:$0xff]  ;;  %2751 = vmatprep.mubr.msk.f32.mxu0 %vm259_vm0, %v257_v7  ;;  %s4234_s30 = sld [smem:[#allocation31_spill]]  ;;  %s4235_s12 = sld [smem:[#allocation34_spill]]  ;;  %vm3628_vm7 = vmmov 0  }
  0xe9   :  { %2762 = vmatprep.mubr.msk.f32.mxu1 %vm259_vm0, %v357_v5  ;;  %2988 = vmatprep.subr.bf16.mxu1 %v2979_v3  ;;  %v2995_v10 = vpack.c.bf16 %v443_v9, %v441_v8  ;;  %v440_v11 = vld [vmem:[%s3664_s25] sm:$0xff]  ;;  %v442_v12 = vld [vmem:[%s3664_s25 + $0x10] sm:$0xff]  ;;  %v445_v13 = vld [vmem:[%s3664_s25 + $0x28] sm:$0xff]  ;;  %s4236_s10 = sld [smem:[#allocation32_spill]]  ;;  %s4237_s11 = sld [smem:[#allocation33_spill]]  ;;  %vm1382_vm9 = vcmask 64512  }
  0xea   :  { %2980 = vmatprep.subr.bf16.mxu0 %v2979_v3  ;;  %2990 = vmatpush3.bf16.msra.mxu1 %v2979_v3  ;;  %v447_v14 = vld [vmem:[%s3664_s25 + $0x38] sm:$0xff]  ;;  %v258_v16 = vld [vmem:[#allocation2 + $0x8] sm:$0xff]  ;;  %v623_v17 = vld [vmem:[#allocation7] sm:$0xff]  ;;  %v2997_v18 = vpack.c.bf16 %v442_v12, %v440_v11  ;;  %s4238_s4 = sld [smem:[#allocation35_spill]]  ;;  %s4239_s15 = sld [smem:[#allocation39_spill]]  ;;  %vm1879_vm11 = vcmask 1043456  }
  0xeb   :  { %2982 = vmatpush3.bf16.msra.mxu0 %v2979_v3  ;;  %2992 = vmatprep.subr.bf16.mxu1 %v2983_v6  ;;  %v358_v15 = vld [vmem:[#allocation5 + $0x8] sm:$0xff]  ;;  %v2999_v19 = vpack.c.bf16 %v447_v14, %v445_v13  ;;  %v444_v20 = vld [vmem:[%s3664_s25 + $0x20] sm:$0xff]  ;;  %v446_v21 = vld [vmem:[%s3664_s25 + $0x30] sm:$0xff]  ;;  %s4240_s9 = sld [smem:[#allocation37_spill]]  ;;  %s4241_s16 = sld [smem:[#allocation36_spill]]  ;;  %vm1875_vm12 = vcmask 31744  }
  0xec   :  { %2984 = vmatprep.subr.bf16.mxu0 %v2983_v6  ;;  %v449_v22 = vld [vmem:[%s3664_s25 + $0x48] sm:$0xff]  ;;  %v451_v23 = vld [vmem:[%s3664_s25 + $0x58] sm:$0xff]  ;;  %v3001_v24 = vpack.c.bf16 %v446_v21, %v444_v20  ;;  %v448_v26 = vld [vmem:[%s3664_s25 + $0x40] sm:$0xff]  ;;  %s4242_s13 = sld [smem:[#allocation40_spill]]  ;;  %s4243_s18 = sld [smem:[#allocation38_spill]]  ;;  %vm2440_vm14 = vcmask 254976  }
  0xed   :  { %v3003_v25 = vpack.c.bf16 %v451_v23, %v449_v22  ;;  %v450_v27 = vld [vmem:[%s3664_s25 + $0x50] sm:$0xff]  ;;  %v453_v28 = vld [vmem:[%s3664_s25 + $0x68] sm:$0xff]  ;;  %v455_v29 = vld [vmem:[%s3664_s25 + $0x78] sm:$0xff] }
  0xee   :  { %2994 = vmatpush3.bf16.msra.mxu1 %v2983_v6  ;;  %v624_v30 = vld [vmem:[#allocation7 + $0x8] sm:$0xff]  ;;  %v3005_v31 = vpack.c.bf16 %v450_v27, %v448_v26  ;;  %v3007_v32 = vpack.c.bf16 %v455_v29, %v453_v28  ;;  %v452_v33 = vld [vmem:[%s3664_s25 + $0x60] sm:$0xff]  ;;  %v454_v34 = vld [vmem:[%s3664_s25 + $0x70] sm:$0xff]  ;;  %s4232_s25 = sld [smem:[#allocation30_spill]] }
  0xef   :  { %2986 = vmatpush3.bf16.msra.mxu0 %v2983_v6  ;;  %3028 = vmatprep.subr.bf16.mxu1 %v2979_v3  ;;  %v3009_v35 = vpack.c.bf16 %v454_v34, %v452_v33  ;;  %v342_v36 = vld [vmem:[%s3659_s21 + $0x8] sm:$0xff]  ;;  %v344_v37 = vld [vmem:[%s3659_s21 + $0x18] sm:$0xff]  ;;  %v341_v40 = vld [vmem:[%s3659_s21] sm:$0xff] }
  0xf0   :  { %2996 = vmatprep.subr.bf16.mxu0 %v2995_v10  ;;  %v3011_v38 = vpack.c.bf16 %v344_v37, %v342_v36  ;;  %v343_v41 = vld [vmem:[%s3659_s21 + $0x10] sm:$0xff]  ;;  %v346_v42 = vld [vmem:[%s3659_s21 + $0x28] sm:$0xff]  ;;  %v348_v43 = vld [vmem:[%s3659_s21 + $0x38] sm:$0xff] }
  0xf1   :  { %2763 = vmatmul.mubr.msk.f32.vlgmr.msra.gmra.mrb[0].mxu1 %vm259_vm0, %v358_v15  ;;  %v3013_v44 = vpack.c.bf16 %v343_v41, %v341_v40  ;;  %v3015_v46 = vpack.c.bf16 %v348_v43, %v346_v42  ;;  %v345_v47 = vld [vmem:[%s3659_s21 + $0x20] sm:$0xff]  ;;  %v347_v48 = vld [vmem:[%s3659_s21 + $0x30] sm:$0xff]  ;;  %v350_v51 = vld [vmem:[%s3659_s21 + $0x48] sm:$0xff] }
  0xf2   :  { %2752 = vmatmul.mubr.msk.f32.vlgmr.msra.gmra.mrb[0].mxu0 %vm259_vm0, %v258_v16  ;;  %3030 = vmatpush3.bf16.msra.mxu1 %v2979_v3  ;;  %v352_v52 = vld [vmem:[%s3659_s21 + $0x58] sm:$0xff]  ;;  %v3017_v54 = vpack.c.bf16 %v347_v48, %v345_v47  ;;  %v349_v56 = vld [vmem:[%s3659_s21 + $0x40] sm:$0xff]  ;;  %v351_v57 = vld [vmem:[%s3659_s21 + $0x50] sm:$0xff] }
  0xf3   :  { %2773 = vmatprep.mubr.msk.f32.mxu1 %vm259_vm0, %v623_v17  ;;  %3032 = vmatprep.subr.bf16.mxu1 %v2983_v6  ;;  %v3019_v55 = vpack.c.bf16 %v352_v52, %v350_v51  ;;  %v354_v58 = vld [vmem:[%s3659_s21 + $0x68] sm:$0xff]  ;;  %v356_v59 = vld [vmem:[%s3659_s21 + $0x78] sm:$0xff]  ;;  %v3021_v60 = vpack.c.bf16 %v351_v57, %v349_v56  ;;  %v353_v62 = vld [vmem:[%s3659_s21 + $0x60] sm:$0xff] }
  0xf4   :  { %2998 = vmatpush1.bf16.msra.mxu0 %v2997_v18  ;;  %527 = vmatprep.mubr.f32.mxu0 %v3627_v39  ;;  %v3023_v61 = vpack.c.bf16 %v356_v59, %v354_v58  ;;  %v355_v63 = vld [vmem:[%s3659_s21 + $0x70] sm:$0xff]  ;;  %v707_v1 = vld [vmem:[%s3669_s29 + $0x8] sm:$0xff]  ;;  %v709_v2 = vld [vmem:[%s3669_s29 + $0x18] sm:$0xff]  ;;  %s4231_s21 = sld [smem:[#allocation27_spill]] }
  0xf5   :  { %3000 = vmatprep.subr.bf16.mxu0 %v2999_v19  ;;  %v3025_v4 = vpack.c.bf16 %v355_v63, %v353_v62  ;;  %v3035_v5 = vpack.c.bf16 %v709_v2, %v707_v1  ;;  %v708_v7 = vld [vmem:[%s3669_s29 + $0x10] sm:$0xff]  ;;  %v711_v8 = vld [vmem:[%s3669_s29 + $0x28] sm:$0xff]  ;;  %v713_v9 = vld [vmem:[%s3669_s29 + $0x38] sm:$0xff] }
  0xf6   :  { %3034 = vmatpush3.bf16.msra.mxu1 %v2983_v6  ;;  %v706_v6 = vld [vmem:[%s3669_s29] sm:$0xff]  ;;  %v3039_v11 = vpack.c.bf16 %v713_v9, %v711_v8  ;;  %v712_v13 = vld [vmem:[%s3669_s29 + $0x30] sm:$0xff]  ;;  %v715_v14 = vld [vmem:[%s3669_s29 + $0x48] sm:$0xff]  ;;  %v811_v9 = vlaneseq }
  0xf7   :  { %v3037_v10 = vpack.c.bf16 %v708_v7, %v706_v6  ;;  %v710_v12 = vld [vmem:[%s3669_s29 + $0x20] sm:$0xff]  ;;  %v717_v15 = vld [vmem:[%s3669_s29 + $0x58] sm:$0xff]  ;;  %v716_v19 = vld [vmem:[%s3669_s29 + $0x50] sm:$0xff] }
  0xf8   :  { %3002 = vmatpush1.bf16.msra.mxu0 %v3001_v24  ;;  %v3041_v16 = vpack.c.bf16 %v712_v13, %v710_v12  ;;  %v3043_v17 = vpack.c.bf16 %v717_v15, %v715_v14  ;;  %v714_v18 = vld [vmem:[%s3669_s29 + $0x40] sm:$0xff]  ;;  %v719_v20 = vld [vmem:[%s3669_s29 + $0x68] sm:$0xff]  ;;  %v721_v21 = vld [vmem:[%s3669_s29 + $0x78] sm:$0xff] }
  0xf9   :  { %3004 = vmatprep.subr.bf16.mxu0 %v3003_v25  ;;  %2774 = vmatmul.mubr.msk.f32.vlgmr.msra.gmra.mrb[2].mxu1 %vm259_vm0, %v624_v30  ;;  %v3045_v22 = vpack.c.bf16 %v716_v19, %v714_v18  ;;  %v3047_v23 = vpack.c.bf16 %v721_v21, %v719_v20  ;;  %v718_v24 = vld [vmem:[%s3669_s29 + $0x60] sm:$0xff]  ;;  %v720_v25 = vld [vmem:[%s3669_s29 + $0x70] sm:$0xff]  ;;  %v930_v28 = vld [vmem:[%s4230_s5 + $0x88] sm:$0xff]  ;;  %s4233_s29 = sld [smem:[#allocation28_spill]] }
  0xfa   :  { %906 = vmatprep.mubr.f32.mxu1 %v3627_v39  ;;  %v3049_v26 = vpack.c.bf16 %v720_v25, %v718_v24  ;;  %v929_v27 = vld [vmem:[%s4230_s5 + $0x80] sm:$0xff]  ;;  %v932_v33 = vld [vmem:[%s4230_s5 + $0x98] sm:$0xff]  ;;  %v915_v36 = vld [vmem:[%s4230_s5 + $0x10] sm:$0xff] }
  0xfb   :  { %v913_v29 = vld [vmem:[%s4230_s5] sm:$0xff]  ;;  %v3091_v30 = vpack.c.bf16 %v930_v28, %v929_v27  ;;  %v916_v37 = vld [vmem:[%s4230_s5 + $0x18] sm:$0xff]  ;;  %v934_v40 = vld [vmem:[%s4230_s5 + $0xa8] sm:$0xff] }
  0xfc   :  { %3006 = vmatpush1.bf16.msra.mxu0 %v3005_v31  ;;  %v914_v31 = vld [vmem:[%s4230_s5 + $0x8] sm:$0xff]  ;;  %v3097_v41 = vpack.c.bf16 %v916_v37, %v915_v36  ;;  %v917_v43 = vld [vmem:[%s4230_s5 + $0x20] sm:$0xff]  ;;  %v939_v57 = vld [vmem:[%s4230_s5 + $0xd0] sm:$0xff] }
  0xfd   :  { %3008 = vmatprep.subr.bf16.mxu0 %v3007_v32  ;;  %v931_v32 = vld [vmem:[%s4230_s5 + $0x90] sm:$0xff]  ;;  %v3093_v34 = vpack.c.bf16 %v914_v31, %v913_v29  ;;  %v937_v51 = vld [vmem:[%s4230_s5 + $0xc0] sm:$0xff]  ;;  %v938_v52 = vld [vmem:[%s4230_s5 + $0xc8] sm:$0xff] }
  0xfe   :  { %v922_v56 = vld [vmem:[%s4230_s5 + $0x48] sm:$0xff]  ;;  %v940_v58 = vld [vmem:[%s4230_s5 + $0xd8] sm:$0xff]  ;;  %v941_v63 = vld [vmem:[%s4230_s5 + $0xe0] sm:$0xff] }
  0xff   :  { %v924_v62 = vld [vmem:[%s4230_s5 + $0x58] sm:$0xff]  ;;  %v809_v12 = vld [vmem:[%s4231_s21] sm:$0x3] }
 0x100   :  { %3010 = vmatpush1.bf16.msra.mxu0 %v3009_v35  ;;  %v3095_v35 = vpack.c.bf16 %v932_v33, %v931_v32  ;;  %v944_v6 = vld [vmem:[%s4230_s5 + $0xf8] sm:$0xff]  ;;  %v837_v36 = vld [vmem:[%s4233_s29] sm:$0xff] }
 0x101   :  { %3012 = vmatprep.subr.bf16.mxu0 %v3011_v38  ;;  %v933_v38 = vld [vmem:[%s4230_s5 + $0xa0] sm:$0xff] }
 0x102   :  { %v3099_v42 = vpack.c.bf16 %v934_v40, %v933_v38  ;;  %v1020_v38 = vld [vmem:[%s4232_s25] sm:$0xff]  ;;  %v1021_v40 = vld [vmem:[%s4232_s25 + $0x8] sm:$0xff] }
 0x1c4   :  { %v2764_v45 = vpop.f32.mrb[0].mxu1 }
 0x1c5   :  { %v2753_v49 = vpop.f32.mrb[0].mxu0  ;;  %v431_v50 = vpop.f32.mrb[1].mxu1 }
 0x1c6   :  { %v332_v53 = vpop.f32.mrb[1].mxu0  ;;  %2497 = vmatmul.mubr.msk.f32.vlgmr.msra.gmra.mrb[2].mxu0 %vm456_vm1, %v431_v50  ;;  %v920_v50 = vld [vmem:[%s4230_s5 + $0x38] sm:$0xff] }
 0x1c7   :  { %3014 = vmatpush1.bf16.msra.mxu0 %v3013_v44  ;;  %533 = vmatprep.mubr.f32.mxu0 %v3627_v39  ;;  %v918_v44 = vld [vmem:[%s4230_s5 + $0x28] sm:$0xff] }
 0x1c8   :  { %3016 = vmatprep.subr.bf16.mxu0 %v3015_v46  ;;  %v936_v46 = vld [vmem:[%s4230_s5 + $0xb8] sm:$0xff]  ;;  %v3101_v47 = vpack.c.bf16 %v918_v44, %v917_v43  ;;  %v945_v43 = vld [vmem:[#allocation8] sm:$0xff]  ;;  %v3061_v44 = vpack.c.bf16 %v1021_v40, %v1020_v38 }
 0x1c9   :  { %v1269_v40 = vld [vmem:[%s4234_s30 + $0x10] sm:$0xff] }
 0x1ca   :  { %2498 = vmatmul.mubr.msk.f32.gmra.mrb[4].mxu0 %vm456_vm1, %v2764_v45  ;;  %v935_v45 = vld [vmem:[%s4230_s5 + $0xb0] sm:$0xff] }
 0x1cb   :  { %3018 = vmatpush1.bf16.msra.mxu0 %v3017_v54  ;;  %610 = vmatprep.mubr.f32.mxu0 %v3627_v39  ;;  %v3103_v48 = vpack.c.bf16 %v936_v46, %v935_v45  ;;  %v3107_v54 = vpack.c.bf16 %v938_v52, %v937_v51  ;;  %v1022_v46 = vld [vmem:[%s4232_s25 + $0x10] sm:$0xff]  ;;  %v1024_v52 = vld [vmem:[%s4232_s25 + $0x20] sm:$0xff] }
 0x1cc   :  { %3020 = vmatprep.subr.bf16.mxu0 %v3019_v55  ;;  %v2775_v0 = vpop.f32.mrb[2].mxu1  ;;  %v921_v55 = vld [vmem:[%s4230_s5 + $0x40] sm:$0xff] }
 0x1cd   :  { %v697_v3 = vpop.f32.mrb[3].mxu1  ;;  %v3109_v59 = vpack.c.bf16 %v922_v56, %v921_v55  ;;  %v1043_v55 = vld [vmem:[%s4232_s25 + $0xb8] sm:$0xff] }
 0x1cf   :  { %3022 = vmatpush1.bf16.msra.mxu0 %v3021_v60  ;;  %v3111_v60 = vpack.c.bf16 %v940_v58, %v939_v57  ;;  %v1026_v58 = vld [vmem:[%s4232_s25 + $0x30] sm:$0xff] }
 0x1d0   :  { %3024 = vmatprep.subr.bf16.mxu0 %v3023_v61  ;;  %v923_v61 = vld [vmem:[%s4230_s5 + $0x50] sm:$0xff] }
 0x1d1   :  { %v3113_v1 = vpack.c.bf16 %v924_v62, %v923_v61  ;;  %v1045_v61 = vld [vmem:[%s4232_s25 + $0xc8] sm:$0xff] }
 0x1d3   :  { %3026 = vmatpush1.bf16.msra.mxu0 %v3025_v4  ;;  %v926_v4 = vld [vmem:[%s4230_s5 + $0x68] sm:$0xff] }
 0x1d4   :  { %3036 = vmatprep.subr.bf16.mxu0 %v3035_v5  ;;  %v943_v5 = vld [vmem:[%s4230_s5 + $0xf0] sm:$0xff] }
 0x1d5   :  { %v3119_v8 = vpack.c.bf16 %v944_v6, %v943_v5  ;;  %v1030_v6 = vld [vmem:[%s4232_s25 + $0x50] sm:$0xff] }
 0x1d6   :  { %2499 = vmatmul.mubr.msk.f32.vlgmr.msra.gmra.mrb[2].mxu0 %vm456_vm1, %v332_v53 }
 0x1d7   :  { %3038 = vmatpush1.bf16.msra.mxu0 %v3037_v10  ;;  %616 = vmatprep.mubr.f32.mxu0 %v3627_v39  ;;  %v812_v10 = vshrl.u32 %v811_v9, 7  ;;  %v1049_v9 = vld [vmem:[%s4232_s25 + $0xe8] sm:$0xff] }
 0x1d8   :  { %3040 = vmatprep.subr.bf16.mxu0 %v3039_v11 }
 0x1d9   :  { %v813_v11 = vsub.s32 0, %v812_v10  ;;  %v817_v13 = vsub.s32 1, %v812_v10 }
 0x1da   :  { %2500 = vmatmul.mubr.msk.f32.gmra.mrb[4].mxu0 %vm456_vm1, %v2753_v49  ;;  %v919_v49 = vld [vmem:[%s4230_s5 + $0x30] sm:$0xff] }
 0x1db   :  { %3042 = vmatpush1.bf16.msra.mxu0 %v3041_v16  ;;  %792 = vmatprep.mubr.f32.mxu0 %v3627_v39  ;;  %v3105_v53 = vpack.c.bf16 %v920_v50, %v919_v49  ;;  %v814_v14 = vrot.slane %v809_v12, %v813_v11  ;;  %v818_v15 = vrot.slane %v809_v12, %v817_v13  ;;  %v1041_v49 = vld [vmem:[%s4232_s25 + $0xa8] sm:$0xff]  ;;  %v1032_v12 = vld [vmem:[%s4232_s25 + $0x60] sm:$0xff] }
 0x1dc   :  { %3044 = vmatprep.subr.bf16.mxu0 %v3043_v17  ;;  %v1033_v13 = vld [vmem:[%s4232_s25 + $0x68] sm:$0xff] }
 0x1df   :  { %3046 = vmatpush1.bf16.msra.mxu0 %v3045_v22 }
 0x1e0   :  { %3048 = vmatprep.subr.bf16.mxu0 %v3047_v23 }
 0x1e3   :  { %3050 = vmatpush1.bf16.msra.mxu0 %v3049_v26 }
 0x1e4   :  { %3092 = vmatprep.subr.bf16.mxu0 %v3091_v30 }
 0x1e6   :  { %2503 = vmatmul.mubr.msk.f32.vlgmr.msra.gmra.mrb[2].mxu0 %vm456_vm1, %v697_v3  ;;  %v925_v3 = vld [vmem:[%s4230_s5 + $0x60] sm:$0xff] }
 0x1e7   :  { %798 = vmatprep.mubr.f32.mxu0 %v3627_v39  ;;  %3094 = vmatpush3.bf16.msra.mxu0 %v3093_v34  ;;  %v3117_v7 = vpack.c.bf16 %v926_v4, %v925_v3  ;;  %v1036_v34 = vld [vmem:[%s4232_s25 + $0x80] sm:$0xff]  ;;  %v1047_v3 = vld [vmem:[%s4232_s25 + $0xd8] sm:$0xff] }
 0x1e8   :  { %3096 = vmatprep.subr.bf16.mxu0 %v3095_v35  ;;  %v1037_v35 = vld [vmem:[%s4232_s25 + $0x88] sm:$0xff] }
 0x1e9   :  { %v3059_v37 = vpack.c.bf16 %v1037_v35, %v1036_v34  ;;  %v1285_v34 = vld [vmem:[%s4234_s30 + $0x90] sm:$0xff]  ;;  %v1286_v35 = vld [vmem:[%s4234_s30 + $0x98] sm:$0xff] }
 0x1ea   :  { %2504 = vmatmul.mubr.msk.f32.gmra.mrb[4].mxu0 %vm456_vm1, %v2775_v0  ;;  %v942_v0 = vld [vmem:[%s4230_s5 + $0xe8] sm:$0xff]  ;;  %v3131_v38 = vpack.c.bf16 %v1286_v35, %v1285_v34  ;;  %v1552_v34 = vld [vmem:[%s4235_s12 + $0x30] sm:$0xff]  ;;  %v1553_v35 = vld [vmem:[%s4235_s12 + $0x38] sm:$0xff] }
 0x1eb   :  { %3098 = vmatpush3.bf16.msra.mxu0 %v3097_v41  ;;  %v3115_v2 = vpack.c.bf16 %v942_v0, %v941_v63  ;;  %v1038_v41 = vld [vmem:[%s4232_s25 + $0x90] sm:$0xff]  ;;  %v1028_v0 = vld [vmem:[%s4232_s25 + $0x40] sm:$0xff] }
 0x1ec   :  { %3100 = vmatprep.subr.bf16.mxu0 %v3099_v42  ;;  %v1039_v42 = vld [vmem:[%s4232_s25 + $0x98] sm:$0xff] }
 0x1ed   :  { %v3063_v45 = vpack.c.bf16 %v1039_v42, %v1038_v41  ;;  %v1270_v41 = vld [vmem:[%s4234_s30 + $0x18] sm:$0xff]  ;;  %v1287_v42 = vld [vmem:[%s4234_s30 + $0xa0] sm:$0xff] }
 0x1ef   :  { %3102 = vmatpush3.bf16.msra.mxu0 %v3101_v47  ;;  %v1023_v47 = vld [vmem:[%s4232_s25 + $0x18] sm:$0xff] }
 0x1f0   :  { %3104 = vmatprep.subr.bf16.mxu0 %v3103_v48  ;;  %v1040_v48 = vld [vmem:[%s4232_s25 + $0xa0] sm:$0xff]  ;;  %v3065_v50 = vpack.c.bf16 %v1023_v47, %v1022_v46  ;;  %v1272_v46 = vld [vmem:[%s4234_s30 + $0x28] sm:$0xff]  ;;  %v1289_v47 = vld [vmem:[%s4234_s30 + $0xb0] sm:$0xff] }
 0x1f1   :  { %v3067_v51 = vpack.c.bf16 %v1041_v49, %v1040_v48  ;;  %v1290_v48 = vld [vmem:[%s4234_s30 + $0xb8] sm:$0xff] }
 0x1f3   :  { %3106 = vmatpush3.bf16.msra.mxu0 %v3105_v53  ;;  %v1025_v53 = vld [vmem:[%s4232_s25 + $0x28] sm:$0xff] }
 0x1f4   :  { %3108 = vmatprep.subr.bf16.mxu0 %v3107_v54  ;;  %v1042_v54 = vld [vmem:[%s4232_s25 + $0xb0] sm:$0xff]  ;;  %v3069_v56 = vpack.c.bf16 %v1025_v53, %v1024_v52  ;;  %v1274_v52 = vld [vmem:[%s4234_s30 + $0x38] sm:$0xff]  ;;  %v1291_v53 = vld [vmem:[%s4234_s30 + $0xc0] sm:$0xff] }
 0x1f5   :  { %v3071_v57 = vpack.c.bf16 %v1043_v55, %v1042_v54  ;;  %v1292_v54 = vld [vmem:[%s4234_s30 + $0xc8] sm:$0xff] }
 0x1f7   :  { %3110 = vmatpush3.bf16.msra.mxu0 %v3109_v59  ;;  %v1027_v59 = vld [vmem:[%s4232_s25 + $0x38] sm:$0xff] }
 0x1f8   :  { %3112 = vmatprep.subr.bf16.mxu0 %v3111_v60  ;;  %v1044_v60 = vld [vmem:[%s4232_s25 + $0xc0] sm:$0xff]  ;;  %v3073_v62 = vpack.c.bf16 %v1027_v59, %v1026_v58  ;;  %v1276_v58 = vld [vmem:[%s4234_s30 + $0x48] sm:$0xff]  ;;  %v1293_v59 = vld [vmem:[%s4234_s30 + $0xd0] sm:$0xff] }
 0x1f9   :  { %v3075_v63 = vpack.c.bf16 %v1045_v61, %v1044_v60  ;;  %v1294_v60 = vld [vmem:[%s4234_s30 + $0xd8] sm:$0xff] }
 0x1fb   :  { %3114 = vmatpush3.bf16.msra.mxu0 %v3113_v1  ;;  %v1029_v1 = vld [vmem:[%s4232_s25 + $0x48] sm:$0xff] }
 0x1fc   :  { %3116 = vmatprep.subr.bf16.mxu0 %v3115_v2  ;;  %v1046_v2 = vld [vmem:[%s4232_s25 + $0xd0] sm:$0xff]  ;;  %v3077_v4 = vpack.c.bf16 %v1029_v1, %v1028_v0  ;;  %v1278_v0 = vld [vmem:[%s4234_s30 + $0x58] sm:$0xff] }
 0x1fd   :  { %v3079_v5 = vpack.c.bf16 %v1047_v3, %v1046_v2  ;;  %v1295_v2 = vld [vmem:[%s4234_s30 + $0xe0] sm:$0xff]  ;;  %v1296_v3 = vld [vmem:[%s4234_s30 + $0xe8] sm:$0xff] }
 0x1ff   :  { %3118 = vmatpush3.bf16.msra.mxu0 %v3117_v7  ;;  %v1031_v7 = vld [vmem:[%s4232_s25 + $0x58] sm:$0xff] }
 0x200   :  { %3120 = vmatprep.subr.bf16.mxu0 %v3119_v8  ;;  %v1048_v8 = vld [vmem:[%s4232_s25 + $0xe0] sm:$0xff]  ;;  %v3081_v10 = vpack.c.bf16 %v1031_v7, %v1030_v6  ;;  %v1280_v6 = vld [vmem:[%s4234_s30 + $0x68] sm:$0xff] }
 0x201   :  { %v3083_v11 = vpack.c.bf16 %v1049_v9, %v1048_v8  ;;  %v1297_v8 = vld [vmem:[%s4234_s30 + $0xf0] sm:$0xff]  ;;  %v1298_v9 = vld [vmem:[%s4234_s30 + $0xf8] sm:$0xff] }
 0x2b9   :  { %v794_v16 = vpop.f32.mrb[2].mxu0 }
 0x2ba   :  { %v821_v17 = vadd.f32 %v814_v14, %v794_v16  ;;  %v796_v18 = vpop.f32.mrb[3].mxu0  ;;  %v3085_v16 = vpack.c.bf16 %v1033_v13, %v1032_v12  ;;  %v1282_v12 = vld [vmem:[%s4234_s30 + $0x78] sm:$0xff] }
 0x2bb   :  { %v822_v19 = vadd.f32 %v818_v15, %v796_v18  ;;  %v1034_v18 = vld [vmem:[%s4232_s25 + $0x70] sm:$0xff] }
 0x2bc   :  { %v829_v21 = vmul.f32 0.01, %v821_v17  ;;  %vm825_vm2 = vcmp.ge.f32.partialorder %v821_v17, 0.0 }
 0x2bd   :  { %v800_v20 = vpop.f32.mrb[4].mxu0  ;;  %v830_v24 = vmul.f32 0.01, %v822_v19  ;;  %vm826_vm3 = vcmp.ge.f32.partialorder %v822_v19, 0.0 }
 0x2be   :  { %v823_v22 = vadd.f32 %v814_v14, %v800_v20  ;;  %v802_v23 = vpop.f32.mrb[5].mxu0  ;;  %v833_v28 = vsel %vm825_vm2, %v821_v17, %v829_v21  ;;  %v1050_v14 = vld [vmem:[%s4232_s25 + $0xf0] sm:$0xff] }
 0x2bf   :  { %v824_v25 = vadd.f32 %v818_v15, %v802_v23  ;;  %v834_v31 = vsel %vm826_vm3, %v822_v19, %v830_v24  ;;  %v1051_v15 = vld [vmem:[%s4232_s25 + $0xf8] sm:$0xff]  ;;  %v927_v21 = vld [vmem:[%s4230_s5 + $0x70] sm:$0xff] }
 0x2c0   :  { %vm827_vm4 = vcmp.ge.f32.partialorder %v823_v22, 0.0  ;;  %v831_v26 = vmul.f32 0.01, %v823_v22  ;;  %v3087_v17 = vpack.c.bf16 %v1051_v15, %v1050_v14  ;;  %v1035_v19 = vld [vmem:[%s4232_s25 + $0x78] sm:$0xff] }
 0x2c1   :  { %vm828_vm5 = vcmp.ge.f32.partialorder %v824_v25, 0.0  ;;  %v832_v27 = vmul.f32 0.01, %v824_v25  ;;  %v3089_v20 = vpack.c.bf16 %v1035_v19, %v1034_v18 }
 0x2c2   :  { %v835_v29 = vsel %vm827_vm4, %v823_v22, %v831_v26  ;;  %v928_v22 = vld [vmem:[%s4230_s5 + $0x78] sm:$0xff]  ;;  %v1283_v26 = vld [vmem:[%s4234_s30 + $0x80] sm:$0xff] }
 0x2c3   :  { %v3954_v30 = vpack.c.bf16 %v835_v29, %v833_v28  ;;  %v836_v32 = vsel %vm828_vm5, %v824_v25, %v832_v27  ;;  %v3121_v23 = vpack.c.bf16 %v928_v22, %v927_v21  ;;  %v1284_v27 = vld [vmem:[%s4234_s30 + $0x88] sm:$0xff] }
 0x2c4   :  { %v3956_v33 = vpack.c.bf16 %v836_v32, %v834_v31  ;;  %v3127_v31 = vpack.c.bf16 %v1284_v27, %v1283_v26  ;;  %v1267_v32 = vld [vmem:[%s4234_s30] sm:$0xff]  ;;  %v1548_v27 = vld [vmem:[%s4235_s12 + $0x10] sm:$0xff] }
 0x2c5   :  { %3122 = vmatpush3.bf16.msra.mxu0 %v3121_v23  ;;  %v3629_v23 = vmov 0.0|0.0  }
 0x2c6   :  { %3052 = vmatprep.subr.bf16.mxu1 %v3956_v33  ;;  %2776 = vmatprep.subr.mxu0 %v3627_v39 }
 0x2c7   :  { %3054 = vmatpush1.bf16.msra.mxu1 %v3954_v30 }
 0x2c8   :  { %3056 = vmatprep.subr.bf16.mxu1 %v3956_v33 }
 0x2ca   :  { %2505 = vmatmul.mubr.msk.f32.vlgmr.msra.gmra.mrb[4].mxu1 %vm838_vm6, %v837_v36  ;;  %v1192_v36 = vld [vmem:[#allocation10] sm:$0xff] }
 0x2cb   :  { %3058 = vmatpush1.bf16.msra.mxu1 %v3954_v30  ;;  %1013 = vmatprep.mubr.f32.mxu1 %v3627_v39 }
 0x2cc   :  { %3060 = vmatprep.subr.bf16.mxu1 %v3059_v37 }
 0x2ce   :  { %2506 = vmatmul.mubr.msk.f32.vlgmr.msra.gmra.mrb[6].mxu1 %vm838_vm6, %v945_v43  ;;  %v1288_v43 = vld [vmem:[%s4234_s30 + $0xa8] sm:$0xff] }
 0x2cf   :  { %3062 = vmatpush3.bf16.msra.mxu1 %v3061_v44  ;;  %v3135_v44 = vpack.c.bf16 %v1288_v43, %v1287_v42  ;;  %v1557_v42 = vld [vmem:[%s4235_s12 + $0x58] sm:$0xff] }
 0x2d0   :  { %3064 = vmatprep.subr.bf16.mxu1 %v3063_v45  ;;  %v1271_v45 = vld [vmem:[%s4234_s30 + $0x20] sm:$0xff] }
 0x2d1   :  { %v3137_v49 = vpack.c.bf16 %v1272_v46, %v1271_v45 }
 0x2d3   :  { %3066 = vmatpush3.bf16.msra.mxu1 %v3065_v50  ;;  %v3139_v50 = vpack.c.bf16 %v1290_v48, %v1289_v47 }
 0x2d4   :  { %3068 = vmatprep.subr.bf16.mxu1 %v3067_v51  ;;  %v1273_v51 = vld [vmem:[%s4234_s30 + $0x30] sm:$0xff] }
 0x2d5   :  { %v3141_v55 = vpack.c.bf16 %v1274_v52, %v1273_v51 }
 0x2d7   :  { %3070 = vmatpush3.bf16.msra.mxu1 %v3069_v56  ;;  %v3143_v56 = vpack.c.bf16 %v1292_v54, %v1291_v53  ;;  %v1381_v53 = vld [vmem:[#allocation11] sm:$0xf] }
 0x2d8   :  { %3072 = vmatprep.subr.bf16.mxu1 %v3071_v57  ;;  %v1275_v57 = vld [vmem:[%s4234_s30 + $0x40] sm:$0xff] }
 0x2d9   :  { %v3145_v61 = vpack.c.bf16 %v1276_v58, %v1275_v57  ;;  %v1472_v57 = vld [vmem:[#allocation13] sm:$0xf] }
 0x2db   :  { %3074 = vmatpush3.bf16.msra.mxu1 %v3073_v62  ;;  %v3147_v62 = vpack.c.bf16 %v1294_v60, %v1293_v59  ;;  %v1458_v59 = vld [vmem:[%s4237_s11 + $0x10] sm:$0xff]  ;;  %v1459_v60 = vld [vmem:[%s4237_s11 + $0x18] sm:$0xff] }
 0x2dc   :  { %3076 = vmatprep.subr.bf16.mxu1 %v3075_v63  ;;  %v1277_v63 = vld [vmem:[%s4234_s30 + $0x50] sm:$0xff] }
 0x2dd   :  { %v3149_v1 = vpack.c.bf16 %v1278_v0, %v1277_v63  ;;  %v1461_v63 = vld [vmem:[%s4237_s11 + $0x28] sm:$0xff] }
 0x2df   :  { %3078 = vmatpush3.bf16.msra.mxu1 %v3077_v4  ;;  %v3151_v4 = vpack.c.bf16 %v1296_v3, %v1295_v2  ;;  %v1463_v2 = vld [vmem:[%s4237_s11 + $0x38] sm:$0xff] }
 0x2e0   :  { %3080 = vmatprep.subr.bf16.mxu1 %v3079_v5  ;;  %v1279_v5 = vld [vmem:[%s4234_s30 + $0x60] sm:$0xff] }
 0x2e1   :  { %v3153_v7 = vpack.c.bf16 %v1280_v6, %v1279_v5  ;;  %v1465_v5 = vld [vmem:[%s4237_s11 + $0x48] sm:$0xff] }
 0x2e3   :  { %3082 = vmatpush3.bf16.msra.mxu1 %v3081_v10  ;;  %v3155_v10 = vpack.c.bf16 %v1298_v9, %v1297_v8  ;;  %v1467_v8 = vld [vmem:[%s4237_s11 + $0x58] sm:$0xff] }
 0x2e4   :  { %3084 = vmatprep.subr.bf16.mxu1 %v3083_v11  ;;  %v1281_v11 = vld [vmem:[%s4234_s30 + $0x70] sm:$0xff] }
 0x2e5   :  { %v3157_v13 = vpack.c.bf16 %v1282_v12, %v1281_v11  ;;  %v1469_v11 = vld [vmem:[%s4237_s11 + $0x68] sm:$0xff] }
 0x2e7   :  { %3086 = vmatpush3.bf16.msra.mxu1 %v3085_v16 }
 0x2e8   :  { %3088 = vmatprep.subr.bf16.mxu1 %v3087_v17 }
 0x2eb   :  { %3090 = vmatpush3.bf16.msra.mxu1 %v3089_v20 }
 0x2ec   :  { %3124 = vmatprep.subr.bf16.mxu1 %v3956_v33  ;;  %v1268_v33 = vld [vmem:[%s4234_s30 + $0x8] sm:$0xff] }
 0x2ed   :  { %v3129_v37 = vpack.c.bf16 %v1268_v33, %v1267_v32  ;;  %v1551_v32 = vld [vmem:[%s4235_s12 + $0x28] sm:$0xff] }
 0x39d   :  { %v908_v24 = vpop.f32.mrb[4].mxu1 }
 0x39e   :  { %v910_v25 = vpop.f32.mrb[5].mxu1 }
 0x39f   :  { %1186 = vmatprep.mubr.f32.mxu0 %v910_v25  ;;  %v1547_v25 = vld [vmem:[%s4235_s12 + $0x8] sm:$0xff] }
 0x3a0   :  { %1187 = vmatmul.mubr.f32.vlgmr.msra.gmra.mrb[6].mxu0 %v908_v24  ;;  %v1546_v24 = vld [vmem:[%s4235_s12] sm:$0xff] }
 0x3a1   :  { %v1015_v28 = vpop.f32.mrb[6].mxu1  ;;  %2778 = vmatprep.mubr.msk.f32.mxu0 %vm3628_vm7, %v3627_v39  ;;  %v3160_v26 = vpack.c.bf16 %v1547_v25, %v1546_v24  ;;  %v1778_v24 = vld [vmem:[%s4238_s4 + $0x10] sm:$0xff]  ;;  %v1779_v25 = vld [vmem:[%s4238_s4 + $0x18] sm:$0xff] }
 0x3a2   :  { %v1017_v29 = vpop.f32.mrb[7].mxu1 }
 0x3a3   :  { %1116 = vmatprep.mubr.f32.mxu1 %v1017_v29 }
 0x3a4   :  { %1117 = vmatmul.mubr.f32.vlgmr.msra.gmra.mrb[8].mxu1 %v1015_v28  ;;  %v1549_v28 = vld [vmem:[%s4235_s12 + $0x18] sm:$0xff] }
 0x3a5   :  { %3126 = vmatpush1.bf16.msra.mxu1 %v3954_v30  ;;  %1260 = vmatprep.mubr.f32.mxu1 %v3627_v39  ;;  %v3133_v30 = vpack.c.bf16 %v1270_v41, %v1269_v40  ;;  %v3163_v29 = vpack.c.bf16 %v1549_v28, %v1548_v27  ;;  %v1556_v41 = vld [vmem:[%s4235_s12 + $0x50] sm:$0xff]  ;;  %v3211_v27 = vpack.c.bf16 %v1779_v25, %v1778_v24 }
 0x3a6   :  { %3128 = vmatprep.subr.bf16.mxu1 %v3127_v31  ;;  %v1550_v31 = vld [vmem:[%s4235_s12 + $0x20] sm:$0xff]  ;;  %v3175_v43 = vpack.c.bf16 %v1557_v42, %v1556_v41  ;;  %v1786_v42 = vld [vmem:[%s4238_s4 + $0x50] sm:$0xff] }
 0x3a7   :  { %v3166_v33 = vpack.c.bf16 %v1551_v32, %v1550_v31  ;;  %v1781_v31 = vld [vmem:[%s4238_s4 + $0x28] sm:$0xff]  ;;  %v2269_v25 = vld [vmem:[%s4242_s13 + $0x30] sm:$0xff] }
 0x3a8   :  { %2507 = vmatmul.mubr.msk.f32.vlgmr.msra.gmra.mrb[10].mxu1 %vm838_vm6, %v1192_v36  ;;  %v3169_v36 = vpack.c.bf16 %v1553_v35, %v1552_v34  ;;  %v1782_v35 = vld [vmem:[%s4238_s4 + $0x30] sm:$0xff] }
 0x3a9   :  { %3130 = vmatpush3.bf16.msra.mxu1 %v3129_v37  ;;  %v1554_v37 = vld [vmem:[%s4235_s12 + $0x40] sm:$0xff] }
 0x3aa   :  { %3132 = vmatprep.subr.bf16.mxu1 %v3131_v38  ;;  %v1555_v38 = vld [vmem:[%s4235_s12 + $0x48] sm:$0xff] }
 0x3ab   :  { %v3172_v40 = vpack.c.bf16 %v1555_v38, %v1554_v37  ;;  %v1784_v38 = vld [vmem:[%s4238_s4 + $0x40] sm:$0xff] }
 0x3ad   :  { %3134 = vmatpush3.bf16.msra.mxu1 %v3133_v30  ;;  %v1558_v30 = vld [vmem:[%s4235_s12 + $0x60] sm:$0xff] }
 0x3ae   :  { %3136 = vmatprep.subr.bf16.mxu1 %v3135_v44  ;;  %v1559_v44 = vld [vmem:[%s4235_s12 + $0x68] sm:$0xff] }
 0x3af   :  { %v3178_v45 = vpack.c.bf16 %v1559_v44, %v1558_v30  ;;  %v1788_v44 = vld [vmem:[%s4238_s4 + $0x60] sm:$0xff] }
 0x3b1   :  { %3138 = vmatpush3.bf16.msra.mxu1 %v3137_v49  ;;  %v2508_v49 = vld [vmem:[%s4236_s10] ss:$0 sm:$0xff] }
 0x3b2   :  { %3140 = vmatprep.subr.bf16.mxu1 %v3139_v50 }
 0x3b5   :  { %3142 = vmatpush3.bf16.msra.mxu1 %v3141_v55  ;;  %v1456_v55 = vld [vmem:[%s4237_s11] sm:$0xff] }
 0x3b6   :  { %3144 = vmatprep.subr.bf16.mxu1 %v3143_v56  ;;  %v1457_v56 = vld [vmem:[%s4237_s11 + $0x8] sm:$0xff] }
 0x3b7   :  { %v3184_v58 = vpack.c.bf16 %v1457_v56, %v1456_v55 }
 0x3b9   :  { %3146 = vmatpush3.bf16.msra.mxu1 %v3145_v61  ;;  %v3187_v61 = vpack.c.bf16 %v1459_v60, %v1458_v59 }
 0x3ba   :  { %3148 = vmatprep.subr.bf16.mxu1 %v3147_v62  ;;  %v1460_v62 = vld [vmem:[%s4237_s11 + $0x20] sm:$0xff] }
 0x3bb   :  { %v3190_v0 = vpack.c.bf16 %v1461_v63, %v1460_v62  ;;  %v1874_v63 = vld [vmem:[#allocation17] sm:$0x3] }
 0x3bd   :  { %3150 = vmatpush3.bf16.msra.mxu1 %v3149_v1  ;;  %v1462_v1 = vld [vmem:[%s4237_s11 + $0x30] sm:$0xff] }
 0x3be   :  { %3152 = vmatprep.subr.bf16.mxu1 %v3151_v4  ;;  %v3193_v3 = vpack.c.bf16 %v1463_v2, %v1462_v1  ;;  %v1464_v4 = vld [vmem:[%s4237_s11 + $0x40] sm:$0xff]  ;;  %v2036_v2 = vld [vmem:[%s4239_s15 + $0x8] sm:$0xff] }
 0x3bf   :  { %v3196_v6 = vpack.c.bf16 %v1465_v5, %v1464_v4  ;;  %v2035_v1 = vld [vmem:[%s4239_s15] sm:$0xff] }
 0x3c0   :  { %v1961_v4 = vld [vmem:[%s4241_s16] sm:$0x3]  ;;  %v3232_v5 = vpack.c.bf16 %v2036_v2, %v2035_v1 }
 0x3c1   :  { %3154 = vmatpush3.bf16.msra.mxu1 %v3153_v7  ;;  %v1466_v7 = vld [vmem:[%s4237_s11 + $0x50] sm:$0xff] }
 0x3c2   :  { %3156 = vmatprep.subr.bf16.mxu1 %v3155_v10  ;;  %v3199_v9 = vpack.c.bf16 %v1467_v8, %v1466_v7  ;;  %v1468_v10 = vld [vmem:[%s4237_s11 + $0x60] sm:$0xff]  ;;  %v2038_v7 = vld [vmem:[%s4239_s15 + $0x18] sm:$0xff] }
 0x3c3   :  { %v3202_v12 = vpack.c.bf16 %v1469_v11, %v1468_v10  ;;  %v2040_v10 = vld [vmem:[%s4239_s15 + $0x28] sm:$0xff] }
 0x3c5   :  { %3158 = vmatpush3.bf16.msra.mxu1 %v3157_v13  ;;  %v1470_v13 = vld [vmem:[%s4237_s11 + $0x70] sm:$0xff] }
 0x3c6   :  { %3159 = vmatprep.subr.bf16.mxu1 %v3629_v23 }
 0x473   :  { %v2610_v14 = vpop.f32.mrb[6].mxu0 }
 0x474   :  { %v2611_v15 = vpop.f32.mrb[7].mxu0 }
 0x475   :  { %v2612_v16 = vadd.f32 %v2611_v15, %v2610_v14  ;;  %v1471_v14 = vld [vmem:[%s4237_s11 + $0x78] sm:$0xff] }
 0x476   :  { %v3205_v15 = vpack.c.bf16 %v1471_v14, %v1470_v13  ;;  %v2042_v13 = vld [vmem:[%s4239_s15 + $0x38] sm:$0xff] }
 0x477   :  { %v2575_v17 = vpop.f32.mrb[8].mxu1 }
 0x478   :  { %v2576_v18 = vpop.f32.mrb[9].mxu1 }
 0x479   :  { %v2577_v19 = vadd.f32 %v2576_v18, %v2575_v17  ;;  %v1561_v17 = vld [vmem:[%s4235_s12 + $0x78] sm:$0xff] }
 0x47b   :  { %v1189_v20 = vadd.f32 %v2612_v16, %v2577_v19  ;;  %v1262_v21 = vpop.f32.mrb[10].mxu1  ;;  %v1560_v16 = vld [vmem:[%s4235_s12 + $0x70] sm:$0xff]  ;;  %v1776_v19 = vld [vmem:[%s4238_s4] sm:$0xff] }
 0x47c   :  { %v1264_v22 = vpop.f32.mrb[11].mxu1  ;;  %v3181_v18 = vpack.c.bf16 %v1561_v17, %v1560_v16  ;;  %v2264_v16 = vld [vmem:[%s4242_s13 + $0x8] sm:$0xff] }
 0x47d   :  { %1363 = vmatprep.mubr.f32.mxu1 %v1264_v22 }
 0x47e   :  { %1364 = vmatmul.mubr.f32.vlgmr.msra.gmra.mrb[12].mxu1 %v1262_v21 }
 0x47f   :  { %2818 = vmatprep.mubr.msk.f32.mxu1 %vm3628_vm7, %v3627_v39  ;;  %3161 = vmatpush3.bf16.msra.mxu1 %v3160_v26 }
 0x480   :  { %3162 = vmatprep.subr.bf16.mxu1 %v3629_v23 }
 0x483   :  { %3164 = vmatpush3.bf16.msra.mxu1 %v3163_v29  ;;  %v1780_v29 = vld [vmem:[%s4238_s4 + $0x20] sm:$0xff] }
 0x484   :  { %3165 = vmatprep.subr.bf16.mxu1 %v3629_v23  ;;  %v3214_v34 = vpack.c.bf16 %v1781_v31, %v1780_v29  ;;  %v1954_v29 = vld [vmem:[%s4243_s18 + $0x8] sm:$0xff] }
 0x487   :  { %3167 = vmatpush3.bf16.msra.mxu1 %v3166_v33  ;;  %v1702_v33 = vld [vmem:[#allocation14] sm:$0xf] }
 0x488   :  { %3168 = vmatprep.subr.bf16.mxu1 %v3629_v23 }
 0x48b   :  { %3170 = vmatpush3.bf16.msra.mxu1 %v3169_v36  ;;  %v1783_v36 = vld [vmem:[%s4238_s4 + $0x38] sm:$0xff] }
 0x48c   :  { %3171 = vmatprep.subr.bf16.mxu1 %v3629_v23  ;;  %v3217_v37 = vpack.c.bf16 %v1783_v36, %v1782_v35  ;;  %v1955_v35 = vld [vmem:[%s4243_s18 + $0x10] sm:$0xff]  ;;  %v1956_v36 = vld [vmem:[%s4243_s18 + $0x18] sm:$0xff] }
 0x48f   :  { %3173 = vmatpush3.bf16.msra.mxu1 %v3172_v40  ;;  %v1785_v40 = vld [vmem:[%s4238_s4 + $0x48] sm:$0xff] }
 0x490   :  { %3174 = vmatprep.subr.bf16.mxu1 %v3629_v23  ;;  %v3220_v41 = vpack.c.bf16 %v1785_v40, %v1784_v38 }
 0x493   :  { %3176 = vmatpush3.bf16.msra.mxu1 %v3175_v43  ;;  %v1787_v43 = vld [vmem:[%s4238_s4 + $0x58] sm:$0xff] }
 0x494   :  { %3177 = vmatprep.subr.bf16.mxu1 %v3629_v23  ;;  %v3223_v30 = vpack.c.bf16 %v1787_v43, %v1786_v42  ;;  %v1957_v42 = vld [vmem:[%s4243_s18 + $0x20] sm:$0xff]  ;;  %v1958_v43 = vld [vmem:[%s4243_s18 + $0x28] sm:$0xff] }
 0x497   :  { %3179 = vmatpush3.bf16.msra.mxu1 %v3178_v45  ;;  %v1789_v45 = vld [vmem:[%s4238_s4 + $0x68] sm:$0xff] }
 0x498   :  { %3180 = vmatprep.subr.bf16.mxu1 %v3629_v23 }
 0x49b   :  { %3182 = vmatpush3.bf16.msra.mxu1 %v3181_v18  ;;  %v2265_v18 = vld [vmem:[%s4242_s13 + $0x10] sm:$0xff] }
 0x49c   :  { %2856 = vmatprep.subr.mxu1 %v3627_v39 }
 0x551   :  { %v2645_v46 = vpop.f32.mrb[12].mxu1 }
 0x552   :  { %v2646_v47 = vpop.f32.mrb[13].mxu1 }
 0x553   :  { %v2647_v48 = vadd.f32 %v2646_v47, %v2645_v46  ;;  %v3226_v46 = vpack.c.bf16 %v1789_v45, %v1788_v44  ;;  %v1790_v47 = vld [vmem:[%s4238_s4 + $0x70] sm:$0xff]  ;;  %v1960_v45 = vld [vmem:[%s4243_s18 + $0x38] sm:$0xff] }
 0x554   :  { %v1959_v44 = vld [vmem:[%s4243_s18 + $0x30] sm:$0xff] }
 0x555   :  { %v1369_v50 = vadd.f32 %v2647_v48, %v1189_v20  ;;  %v1777_v20 = vld [vmem:[%s4238_s4 + $0x8] sm:$0xff]  ;;  %v1791_v48 = vld [vmem:[%s4238_s4 + $0x78] sm:$0xff] }
 0x556   :  { %v3208_v21 = vpack.c.bf16 %v1777_v20, %v1776_v19  ;;  %v2266_v19 = vld [vmem:[%s4242_s13 + $0x18] sm:$0xff] }
 0x557   :  { %v1377_v51 = vadd.f32 %v2508_v49, %v1369_v50  ;;  %v3229_v49 = vpack.c.bf16 %v1791_v48, %v1790_v47  ;;  %v3259_v20 = vpack.c.bf16 %v2266_v19, %v2265_v18  ;;  %v2356_v47 = vld [vmem:[%s3784_s3] sm:$0xff]  ;;  %v2357_v48 = vld [vmem:[%s3784_s3 + $0x8] sm:$0xff] }
 0x559   :  { %vm1378_vm8 = vcmp.ge.f32.partialorder %v1377_v51, 0.0  ;;  %v1379_v52 = vmul.f32 0.01, %v1377_v51 }
 0x55b   :  { %v4064_v54 = vsel %vm1378_vm8, %v1377_v51, %v1379_v52 }
 0x55c   :  { %2777 = vmatpush3.msra.mxu0 %v4064_v54 }
 0x55d   :  { %2779 = vmatmul.mubr.msk.f32.vlgmr.msra.gmra.mrb[8].mxu0 %vm1382_vm9, %v1381_v53  ;;  %2781 = vmatprep.subr.mxu0 %v3627_v39 }
 0x55e   :  { %2782 = vmatpush3.msra.mxu0 %v4064_v54  ;;  %2783 = vmatprep.mubr.msk.f32.mxu0 %vm3628_vm7, %v3627_v39 }
 0x55f   :  { %3183 = vmatprep.subr.bf16.mxu0 %v3629_v23 }
 0x561   :  { %2784 = vmatmul.mubr.msk.f32.vlgmr.msra.gmra.mrb[10].mxu0 %vm1382_vm9, %v1472_v57 }
 0x562   :  { %3185 = vmatpush3.bf16.msra.mxu0 %v3184_v58  ;;  %2853 = vmatprep.mubr.msk.f32.mxu0 %vm3628_vm7, %v3627_v39  ;;  %v2512_v58 = vld [vmem:[#allocation16] ss:$0 sm:$0xff] }
 0x563   :  { %3186 = vmatprep.subr.bf16.mxu0 %v3629_v23 }
 0x566   :  { %3188 = vmatpush3.bf16.msra.mxu0 %v3187_v61 }
 0x567   :  { %3189 = vmatprep.subr.bf16.mxu0 %v3629_v23 }
 0x56a   :  { %3191 = vmatpush3.bf16.msra.mxu0 %v3190_v0 }
 0x56b   :  { %3192 = vmatprep.subr.bf16.mxu0 %v3629_v23 }
 0x56e   :  { %3194 = vmatpush3.bf16.msra.mxu0 %v3193_v3  ;;  %v2189_v3 = vld [vmem:[%s4240_s9] sm:$0x3] }
 0x56f   :  { %3195 = vmatprep.subr.bf16.mxu0 %v3629_v23 }
 0x572   :  { %3197 = vmatpush3.bf16.msra.mxu0 %v3196_v6  ;;  %v2037_v6 = vld [vmem:[%s4239_s15 + $0x10] sm:$0xff] }
 0x573   :  { %3198 = vmatprep.subr.bf16.mxu0 %v3629_v23  ;;  %v3235_v8 = vpack.c.bf16 %v2038_v7, %v2037_v6 }
 0x576   :  { %3200 = vmatpush3.bf16.msra.mxu0 %v3199_v9  ;;  %v2039_v9 = vld [vmem:[%s4239_s15 + $0x20] sm:$0xff] }
 0x577   :  { %3201 = vmatprep.subr.bf16.mxu0 %v3629_v23  ;;  %v3238_v11 = vpack.c.bf16 %v2040_v10, %v2039_v9 }
 0x57a   :  { %3203 = vmatpush3.bf16.msra.mxu0 %v3202_v12  ;;  %v2041_v12 = vld [vmem:[%s4239_s15 + $0x30] sm:$0xff] }
 0x57b   :  { %3204 = vmatprep.subr.bf16.mxu0 %v3629_v23  ;;  %v3241_v14 = vpack.c.bf16 %v2042_v13, %v2041_v12 }
 0x57e   :  { %3206 = vmatpush3.bf16.msra.mxu0 %v3205_v15  ;;  %v2263_v15 = vld [vmem:[%s4242_s13] sm:$0xff] }
 0x57f   :  { %3207 = vmatprep.subr.bf16.mxu0 %v3629_v23  ;;  %v3256_v17 = vpack.c.bf16 %v2264_v16, %v2263_v15 }
 0x630   :  { %v1452_v22 = vpop.f32.mrb[8].mxu0 }
 0x631   :  { %v2780_v26 = vpop.f32.mrb[9].mxu0  ;;  %2854 = vmatmul.mubr.f32.vlgmr.msra.gmra.mrb[12].mxu0 %v1452_v22  ;;  %v2268_v22 = vld [vmem:[%s4242_s13 + $0x28] sm:$0xff] }
 0x632   :  { %3209 = vmatpush3.bf16.msra.mxu0 %v3208_v21  ;;  %2893 = vmatprep.mubr.msk.f32.mxu0 %vm3628_vm7, %v3627_v39  ;;  %v2267_v21 = vld [vmem:[%s4242_s13 + $0x20] sm:$0xff]  ;;  %v2270_v26 = vld [vmem:[%s4242_s13 + $0x38] sm:$0xff] }
 0x633   :  { %3210 = vmatprep.subr.bf16.mxu0 %v3629_v23  ;;  %v3262_v24 = vpack.c.bf16 %v2268_v22, %v2267_v21 }
 0x634   :  { %v1542_v28 = vpop.f32.mrb[10].mxu0 }
 0x635   :  { %v2785_v32 = vpop.f32.mrb[11].mxu0  ;;  %2819 = vmatmul.mubr.f32.vlgmr.msra.gmra.mrb[14].mxu1 %v1542_v28  ;;  %v1953_v28 = vld [vmem:[%s4243_s18] sm:$0xff] }
 0x636   :  { %2857 = vmatpush3.msra.mxu1 %v4064_v54  ;;  %2858 = vmatprep.mubr.msk.f32.mxu1 %vm3628_vm7, %v3627_v39 }
 0x637   :  { %3212 = vmatpush3.bf16.msra.mxu0 %v3211_v27  ;;  %2896 = vmatprep.subr.mxu1 %v3627_v39  ;;  %v3265_v27 = vpack.c.bf16 %v2270_v26, %v2269_v25 }
 0x638   :  { %3213 = vmatprep.subr.bf16.mxu0 %v3629_v23 }
 0x639   :  { %2859 = vmatmul.mubr.msk.f32.vlgmr.msra.gmra.mrb[16].mxu1 %vm1382_vm9, %v1702_v33  ;;  %v3244_v33 = vpack.c.bf16 %v1954_v29, %v1953_v28 }
 0x63a   :  { %2898 = vmatprep.mubr.msk.f32.mxu1 %vm3628_vm7, %v3627_v39 }
 0x63b   :  { %3215 = vmatpush3.bf16.msra.mxu0 %v3214_v34 }
 0x63c   :  { %3216 = vmatprep.subr.bf16.mxu0 %v3629_v23 }
 0x63f   :  { %3218 = vmatpush3.bf16.msra.mxu0 %v3217_v37 }
 0x640   :  { %3219 = vmatprep.subr.bf16.mxu0 %v3629_v23 }
 0x643   :  { %3221 = vmatpush3.bf16.msra.mxu0 %v3220_v41  ;;  %v3247_v41 = vpack.c.bf16 %v1956_v36, %v1955_v35 }
 0x644   :  { %3222 = vmatprep.subr.bf16.mxu0 %v3629_v23 }
 0x647   :  { %3224 = vmatpush3.bf16.msra.mxu0 %v3223_v30  ;;  %v3250_v30 = vpack.c.bf16 %v1958_v43, %v1957_v42 }
 0x648   :  { %3225 = vmatprep.subr.bf16.mxu0 %v3629_v23 }
 0x64b   :  { %3227 = vmatpush3.bf16.msra.mxu0 %v3226_v46  ;;  %v3253_v46 = vpack.c.bf16 %v1960_v45, %v1959_v44 }
 0x64c   :  { %3228 = vmatprep.subr.bf16.mxu0 %v3629_v23 }
 0x64f   :  { %3230 = vmatpush3.bf16.msra.mxu0 %v3229_v49  ;;  %v3268_v49 = vpack.c.bf16 %v2357_v48, %v2356_v47 }
 0x650   :  { %2944 = vmatprep.subr.mxu0 %v3627_v39 }
 0x704   :  { %v1698_v50 = vpop.f32.mrb[12].mxu0 }
 0x705   :  { %v2855_v51 = vpop.f32.mrb[13].mxu0 }
 0x706   :  { %v2359_v51 = vld [vmem:[%s3784_s3 + $0x18] sm:$0xff] }
 0x708   :  { %v1628_v52 = vpop.f32.mrb[14].mxu1 }
 0x709   :  { %v1699_v53 = vadd.f32 %v1698_v50, %v1628_v52  ;;  %v2820_v54 = vpop.f32.mrb[15].mxu1  ;;  %v2358_v50 = vld [vmem:[%s3784_s3 + $0x10] sm:$0xff]  ;;  %s3630_s3 = smov [#allocation19]  }
 0x70a   :  { %v3271_v52 = vpack.c.bf16 %v2359_v51, %v2358_v50  ;;  %s2448_s22 = sshll.u32 %s3630_s3, 4  ;;  %s2449_s22 = int_to_ptr.vmem [resolvable:$true] %s2448_s22 }
 0x70b   :  { %s3548_s23 = scalar_lea.vmem %s2449_s22, 32  ;;  %p3553_p11 = scmp.lt.s32.totalorder %s2449_s22, %s2449_s22 }
 0x70c   :  { %v1772_v55 = vpop.f32.mrb[16].mxu1  ;;  %p3549_p10 = scmp.ne.s32.totalorder %s2449_s22, %s3548_s23  ;;  %p3554_p12 = scmp.lt.s32.totalorder %s3548_s23, %s3548_s23 }
 0x70d   :  { %v2860_v56 = vpop.f32.mrb[17].mxu1  ;;  %2894 = vmatmul.mubr.f32.vlgmr.msra.gmra.mrb[14].mxu0 %v1772_v55 }
 0x70e   :  { %2946 = vmatprep.mubr.msk.f32.mxu0 %vm3628_vm7, %v3627_v39  ;;  %p3555_p13 = por %p3554_p12, %p3553_p11 }
 0x710   :  { %p3556_p0 = pnand %p3555_p13, %p3549_p10 }
 0x7e0   :  { %v1858_v57 = vpop.f32.mrb[14].mxu0 }
 0x7e1   :  { %v1862_v59 = vadd.f32 %v1858_v57, %v1699_v53  ;;  %v2895_v60 = vpop.f32.mrb[15].mxu0 }
 0x7e3   :  { %v1870_v61 = vadd.f32 %v2512_v58, %v1862_v59 }
 0x7e5   :  { %vm1871_vm10 = vcmp.ge.f32.partialorder %v1870_v61, 0.0  ;;  %v1872_v62 = vmul.f32 0.01, %v1870_v61 }
 0x7e7   :  { %v1873_v0 = vsel %vm1871_vm10, %v1870_v61, %v1872_v62 }
 0x7e8   :  { %2897 = vmatpush3.msk.msra.mxu1 %vm1879_vm11, %v1873_v0  ;;  %2945 = vmatpush3.msk.msra.mxu0 %vm1879_vm11, %v1873_v0 }
 0x7e9   :  { %2899 = vmatmul.mubr.msk.f32.vlgmr.msra.gmra.mrb[18].mxu1 %vm1875_vm12, %v1874_v63  ;;  %2901 = vmatprep.subr.mxu1 %v3627_v39 }
 0x7ea   :  { %2902 = vmatpush3.msk.msra.mxu1 %vm1879_vm11, %v1873_v0  ;;  %2903 = vmatprep.mubr.msk.f32.mxu1 %vm3628_vm7, %v3627_v39 }
 0x7eb   :  { %2947 = vmatmul.mubr.msk.f32.vlgmr.msra.gmra.mrb[16].mxu0 %vm1875_vm12, %v2189_v3  ;;  %3231 = vmatprep.subr.bf16.mxu1 %v3629_v23 }
 0x7ec   :  { %3255 = vmatprep.subr.bf16.mxu0 %v3629_v23  ;;  %2965 = vmatprep.mubr.msk.f32.mxu0 %vm3628_vm7, %v3627_v39 }
 0x7ed   :  { %2904 = vmatmul.mubr.msk.f32.vlgmr.msra.gmra.mrb[20].mxu1 %vm1875_vm12, %v1961_v4  ;;  %3257 = vmatpush3.bf16.msra.mxu0 %v3256_v17 }
 0x7ee   :  { %3233 = vmatpush3.bf16.msra.mxu1 %v3232_v5  ;;  %2922 = vmatprep.mubr.msk.f32.mxu1 %vm3628_vm7, %v3627_v39 }
 0x7ef   :  { %3234 = vmatprep.subr.bf16.mxu1 %v3629_v23  ;;  %3258 = vmatprep.subr.bf16.mxu0 %v3629_v23 }
 0x7f1   :  { %3260 = vmatpush3.bf16.msra.mxu0 %v3259_v20 }
 0x7f2   :  { %3236 = vmatpush3.bf16.msra.mxu1 %v3235_v8  ;;  %3261 = vmatprep.subr.bf16.mxu0 %v3629_v23 }
 0x7f3   :  { %3237 = vmatprep.subr.bf16.mxu1 %v3629_v23 }
 0x7f5   :  { %3263 = vmatpush3.bf16.msra.mxu0 %v3262_v24 }
 0x7f6   :  { %3239 = vmatpush3.bf16.msra.mxu1 %v3238_v11  ;;  %3264 = vmatprep.subr.bf16.mxu0 %v3629_v23 }
 0x7f7   :  { %3240 = vmatprep.subr.bf16.mxu1 %v3629_v23 }
 0x7f9   :  { %3266 = vmatpush3.bf16.msra.mxu0 %v3265_v27 }
 0x7fa   :  { %3242 = vmatpush3.bf16.msra.mxu1 %v3241_v14 }
 0x7fb   :  { %3243 = vmatprep.subr.bf16.mxu1 %v3629_v23 }
 0x8bc   :  { %v1949_v31 = vpop.f32.mrb[18].mxu1 }
 0x8bd   :  { %v2900_v32 = vpop.f32.mrb[19].mxu1 }
 0x8be   :  { %v2259_v34 = vpop.f32.mrb[16].mxu0 }
 0x8bf   :  { %2966 = vmatmul.mubr.msk.f32.vlgmr.msra.gmra.mrb[18].mxu0 %vm456_vm1, %v2259_v34  ;;  %v2948_v37 = vpop.f32.mrb[17].mxu0 }
 0x8c0   :  { %v2031_v38 = vpop.f32.mrb[20].mxu1 }
 0x8c1   :  { %2923 = vmatmul.mubr.msk.f32.vlgmr.msra.gmra.mrb[22].mxu1 %vm456_vm1, %v2031_v38  ;;  %v2905_v40 = vpop.f32.mrb[21].mxu1 }
 0x8c2   :  { %3245 = vmatpush3.bf16.msra.mxu1 %v3244_v33  ;;  %2941 = vmatprep.mubr.msk.f32.mxu1 %vm3628_vm7, %v3627_v39 }
 0x8c3   :  { %3246 = vmatprep.subr.bf16.mxu1 %v3629_v23 }
 0x8c6   :  { %3248 = vmatpush3.bf16.msra.mxu1 %v3247_v41 }
 0x8c7   :  { %3249 = vmatprep.subr.bf16.mxu1 %v3629_v23 }
 0x8ca   :  { %3251 = vmatpush3.bf16.msra.mxu1 %v3250_v30 }
 0x8cb   :  { %3252 = vmatprep.subr.bf16.mxu1 %v3629_v23 }
 0x8ce   :  { %3254 = vmatpush3.bf16.msra.mxu1 %v3253_v46 }
 0x8cf   :  { %3267 = vmatprep.subr.bf16.mxu1 %v3629_v23 }
 0x8d1   :  { %2942 = vmatmul.mubr.msk.f32.vlgmr.msra.gmra.mrb[24].mxu1 %vm456_vm1, %v1949_v31 }
 0x8d2   :  { %2976 = vmatprep.mubr.msk.f32.mxu1 %vm3628_vm7, %v3627_v39  ;;  %3269 = vmatpush3.bf16.msra.mxu1 %v3268_v49  ;;  %v2522_v39 = vld [vmem:[%s3779_s8] ss:$0 sm:$0xff] }
 0x8d3   :  { %3270 = vmatprep.subr.bf16.mxu1 %v3629_v23  ;;  %v2523_v23 = vld [vmem:[%s3789_s24] ss:$0 sm:$0xff] }
 0x8d6   :  { %3272 = vmatpush3.bf16.msra.mxu1 %v3271_v52 }
 0x992   :  { %v2340_v53 = vpop.f32.mrb[18].mxu0 }
 0x993   :  { %v2967_v54 = vpop.f32.mrb[19].mxu0 }
 0x994   :  { %v2112_v55 = vpop.f32.mrb[22].mxu1 }
 0x995   :  { %v2924_v56 = vpop.f32.mrb[23].mxu1 }
 0x9a4   :  { %v2185_v57 = vpop.f32.mrb[24].mxu1 }
 0x9a5   :  { %v2186_v58 = vadd.f32 %v2185_v57, %v2112_v55  ;;  %v2943_v59 = vpop.f32.mrb[25].mxu1 }
 0x9a7   :  { %v2344_v60 = vadd.f32 %v2340_v53, %v2186_v58 }
 0x9a9   :  { %v2352_v61 = vadd.f32 %v2522_v39, %v2344_v60 }
 0x9ab   :  { %vm2353_vm13 = vcmp.ge.f32.partialorder %v2352_v61, 0.0  ;;  %v2354_v62 = vmul.f32 0.01, %v2352_v61 }
 0x9ad   :  { %v2355_v63 = vsel %vm2353_vm13, %v2352_v61, %v2354_v62 }
 0x9ae   :  { %2977 = vmatmul.mubr.msk.f32.vlgmr.msra.gmra.mrb[26].mxu1 %vm259_vm0, %v2355_v63 }
 0xa81   :  { %v2436_v0 = vpop.f32.mrb[26].mxu1 }
 0xa82   :  { %v2437_v1 = vadd.f32 %v2523_v23, %v2436_v0  ;;  %v2978_v2 = vpop.f32.mrb[27].mxu1 }
 0xa84   :  { %2441 = vst.msk [vmem:[#allocation19] sm:$0x3] %vm2440_vm14, %v2437_v1 }
 0xa85   :  { %3559 = shalt.err (!%p3556_p0)
}
 0xa86   :  { %s3560_s8 = scalar_lea.hbm %s3794_s6, 32 }
 0xa87   :  { %p3561_p1 = scmp.ne.s32.totalorder %s3794_s6, %s3560_s8  ;;  %p3564_p2 = scmp.lt.u32.totalorder %s3560_s8, %s3794_s6 }
 0xa89   :  { %p3566_p3 = pnand %p3564_p2, %p3561_p1 }
 0xa8b   :  { %3569 = shalt.err (!%p3566_p3)
}
 0xa8c   :  { %2451 = dma.vmem_to_hbm [thread:$0]  %s2449_s22, 32, %s3794_s6, [#allocation4]  }
 0xa8d   :  { %3582 = dma.done.wait [#allocation4], 32  }
 0xa8e   :  { %3583 = vsyncadd [#allocation4], 4294967264 }
 0xa8f   :  { %2455 = vsyncpa [#allocation3], 1 }
 0xa90   :  { %2456 = vsyncpa [#allocation6], 1 }
 0xa91   :  { %2457 = vsyncpa [#allocation9], 1 }
 0xa92   :  { %2458 = vsyncpa [#allocation12], 1 }
 0xa93   :  { %2459 = vsyncpa [#allocation15], 1 }
 0xa94   :  { %2460 = vsyncpa [#allocation18], 1 }
 0xa95   :  { %2461 = vsyncpa [#allocation4], 1 }

</bundles_post_ra>
